<compile_context>
chip_gen: v5e
topology: v5e:2x2
jax: 0.10.0
libtpu: 0.0.40
codegen_flags: <defaults>
</compile_context>

<pallas_src>
import math
import functools

import jax
import jax.numpy as jnp
from jax.experimental import pallas as pl
from jax.experimental.pallas import tpu as pltpu

# bf16 feeds the MXU fast path on v6e/v7x (and captures most of the win on v5e);
# accumulation is f32 via preferred_element_type.  Set to jnp.float32 for
# bit-faithful f32 matmuls.
_MXU_DTYPE = jnp.bfloat16


def _encoder_kernel(x_ref, unif_ref,
                    g1_ref, b1_ref,
                    wc1_ref, bc1_ref, wc2_ref, bc2_ref,
                    wu1_ref, bu1_ref, wu2_ref, bu2_ref,
                    wq_ref, bq_ref, wk_ref, bk_ref, wv_ref, bv_ref,
                    wfc_ref, bfc_ref,
                    g2_ref, b2_ref,
                    wf1_ref, bf1_ref, wf2_ref, bf2_ref,
                    rate_ref,
                    o_ref, *, n_heads):
    f32 = jnp.float32
    Bt, S, H = x_ref.shape
    hd = H // n_heads
    N = Bt * S

    def dot(a, w):
        return jnp.dot(a.astype(_MXU_DTYPE), w.astype(_MXU_DTYPE),
                       preferred_element_type=f32)

    def bdot(eq, a, b):
        return jnp.einsum(eq, a.astype(_MXU_DTYPE), b.astype(_MXU_DTYPE),
                          preferred_element_type=f32)

    def layer_norm(z, g, beta):            # PyTorch LayerNorm: biased var, eps=1e-5
        mu = jnp.mean(z, axis=-1, keepdims=True)
        var = jnp.mean((z - mu) ** 2, axis=-1, keepdims=True)
        return (z - mu) * jax.lax.rsqrt(var + 1e-5) * g + beta

    x = x_ref[...].reshape(N, H)           # all rows of the block; lane dim = H

    # ---------------- norm1 ----------------
    h = layer_norm(x, g1_ref[...], b1_ref[...])

    # ---- NCACell.perception: Conv1d(k=3, pad=1) -> ReLU -> Conv1d(k=1) ----
    # zero-padded per-sequence shifts + one fused (N, 3H) @ (3H, 2H) matmul.
    h3 = h.reshape(Bt, S, H)
    zrow = jnp.zeros((Bt, 1, H), f32)
    h_prev = jnp.concatenate([zrow, h3[:, :S - 1, :]], axis=1).reshape(N, H)
    h_next = jnp.concatenate([h3[:, 1:, :], zrow], axis=1).reshape(N, H)
    hcat = jnp.concatenate([h_prev, h, h_next], axis=-1)            # (N, 3H)
    p = jnp.maximum(dot(hcat, wc1_ref[...]) + bc1_ref[...], 0.0)    # (N, 2H)
    dx = dot(p, wc2_ref[...]) + bc2_ref[...]                        # (N, H)

    # ---- NCACell.update: Linear -> ReLU -> Linear -> Tanh ----
    u = jnp.maximum(dot(dx, wu1_ref[...]) + bu1_ref[...], 0.0)
    dx = jnp.tanh(dot(u, wu2_ref[...]) + bu2_ref[...])

    # ---- stochastic update gate: rand_like(x) < sigmoid(update_rate) ----
    gate = (unif_ref[...].reshape(N, H)
            < jax.nn.sigmoid(rate_ref[...])).astype(f32)
    hn = h + dx * gate                                              # NCACell output

    # ---- multi-head self-attention (dropout = identity in eval mode) ----
    # TODO(synk): attention mask (mask != None path) not implemented; test uses mask=None.
    q = dot(hn, wq_ref[...]) + bq_ref[...]
    k = dot(hn, wk_ref[...]) + bk_ref[...]
    v = dot(hn, wv_ref[...]) + bv_ref[...]
    inv_scale = 1.0 / math.sqrt(hd)
    ctx_parts = []
    for hh in range(n_heads):      # static unroll; every dot below is batched over Bt
        lo = hh * hd
        qh = q[:, lo:lo + hd].reshape(Bt, S, hd)
        kh = k[:, lo:lo + hd].reshape(Bt, S, hd)
        vh = v[:, lo:lo + hd].reshape(Bt, S, hd)
        s = bdot('bqd,bkd->bqk', qh, kh) * inv_scale                # (Bt, S, S) f32
        s = s - jnp.max(s, axis=-1, keepdims=True)
        e = jnp.exp(s)
        a = e / jnp.sum(e, axis=-1, keepdims=True)                  # softmax in f32
        ctx_parts.append(bdot('bqk,bkd->bqd', a, vh))               # (Bt, S, hd)
    ctx = jnp.concatenate(ctx_parts, axis=-1).reshape(N, H)
    attn_out = dot(ctx, wfc_ref[...]) + bfc_ref[...]

    # ---- residual + norm2 + feed-forward + residual ----
    x1 = x + attn_out
    h2 = layer_norm(x1, g2_ref[...], b2_ref[...])
    f = jnp.maximum(dot(h2, wf1_ref[...]) + bf1_ref[...], 0.0)
    ff_out = dot(f, wf2_ref[...]) + bf2_ref[...]
    o_ref[...] = (x1 + ff_out).reshape(Bt, S, H)


def nca_encoder_layer(x, params, key, *, n_heads, block_batch=None):
    """x: (B, S, H) float32.  params: kernel-layout (pre-transposed) weights.
    key: jax.random key used for the stochastic NCA update mask."""
    B, S, H = x.shape
    assert H % n_heads == 0
    Bt = B if block_batch is None else block_batch
    assert B % Bt == 0

    (g1, b1, wc1, bc1, wc2, bc2, wu1, bu1, wu2, bu2,
     wq, bq, wk, bk, wv, bv, wfc, bfc, g2, b2,
     wf1, bf1, wf2, bf2, rate) = params

    # torch.rand_like(x): sampled host-side, compared in-kernel vs sigmoid(rate).
    unif = jax.random.uniform(key, (B, S, H), jnp.float32)

    consts = [g1, b1, wc1, bc1, wc2, bc2, wu1, bu1, wu2, bu2,
              wq, bq, wk, bk, wv, bv, wfc, bfc, g2, b2,
              wf1, bf1, wf2, bf2, rate]

    def full_spec(p):
        nd = p.ndim
        return pl.BlockSpec(p.shape, lambda i, _nd=nd: (0,) * _nd)

    act_spec = pl.BlockSpec((Bt, S, H), lambda i: (i, 0, 0))
    in_specs = [act_spec, act_spec] + [full_spec(p) for p in consts]

    kernel = functools.partial(_encoder_kernel, n_heads=n_heads)

    return pl.pallas_call(
        kernel,
        out_shape=jax.ShapeDtypeStruct((B, S, H), jnp.float32),
        grid=(B // Bt,),
        in_specs=in_specs,
        out_specs=act_spec,
        compiler_params=pltpu.CompilerParams(
            dimension_semantics=("parallel",)),   # batch blocks are independent
    )(x, unif, *consts)


if __name__ == "__main__":
    B, S, H, NH, FF = 2, 8, 32, 4, 64
    NCAH = 2 * H                           # NCACell hidden_dim = hidden_dim * 2

    ks = iter(jax.random.split(jax.random.PRNGKey(0), 32))
    x = jax.random.normal(next(ks), (B, S, H), jnp.float32)

    def w(shape, scale=0.1):
        return scale * jax.random.normal(next(ks), shape, jnp.float32)

    # PyTorch-layout parameters ...
    conv1_w, conv1_b = w((NCAH, H, 3)), w((NCAH,), 0.05)    # Conv1d(H, 2H, k=3)
    conv2_w, conv2_b = w((H, NCAH, 1)), w((H,), 0.05)       # Conv1d(2H, H, k=1)
    up1_w, up1_b = w((NCAH, H)), w((NCAH,), 0.05)           # Linear(H, 2H)
    up2_w, up2_b = w((H, NCAH)), w((H,), 0.05)              # Linear(2H, H)
    q_w, q_b = w((H, H)), w((H,), 0.05)
    k_w, k_b = w((H, H)), w((H,), 0.05)
    v_w, v_b = w((H, H)), w((H,), 0.05)
    fc_w, fc_b = w((H, H)), w((H,), 0.05)
    ff1_w, ff1_b = w((FF, H)), w((FF,), 0.05)               # Linear(H, FF)
    ff2_w, ff2_b = w((H, FF)), w((H,), 0.05)                # Linear(FF, H)

    # ... repacked into kernel layout (Linear weights transposed; conv1 taps
    # stacked along the contraction dim so the 3-tap conv is one matmul).
    params = (
        jnp.ones((1, H), jnp.float32), jnp.zeros((1, H), jnp.float32),   # norm1 γ, β
        jnp.concatenate([conv1_w[:, :, 0].T, conv1_w[:, :, 1].T,
                         conv1_w[:, :, 2].T], axis=0),                   # (3H, 2H)
        conv1_b[None, :],
        conv2_w[:, :, 0].T, conv2_b[None, :],                            # (2H, H)
        up1_w.T, up1_b[None, :], up2_w.T, up2_b[None, :],
        q_w.T, q_b[None, :], k_w.T, k_b[None, :], v_w.T, v_b[None, :],
        fc_w.T, fc_b[None, :],
        jnp.ones((1, H), jnp.float32), jnp.zeros((1, H), jnp.float32),   # norm2 γ, β
        ff1_w.T, ff1_b[None, :], ff2_w.T, ff2_b[None, :],
        jnp.full((1, 1), 0.5, jnp.float32),                              # update_rate
    )

    out = nca_encoder_layer(x, params, jax.random.PRNGKey(1234), n_heads=NH)
    jax.block_until_ready(out)
    assert out.shape == (B, S, H) and out.dtype == jnp.float32
    print("KERNEL_OK")
</pallas_src>

<mosaic_0001>
module attributes {stable_mosaic.version = 11 : i64} {
  func.func @_encoder_kernel(%arg0: i32, %arg1: memref<2x8x32xf32, #tpu.memory_space<vmem>>, %arg2: memref<2x8x32xf32, #tpu.memory_space<vmem>>, %arg3: memref<1x32xf32, #tpu.memory_space<vmem>>, %arg4: memref<1x32xf32, #tpu.memory_space<vmem>>, %arg5: memref<96x64xf32, #tpu.memory_space<vmem>>, %arg6: memref<1x64xf32, #tpu.memory_space<vmem>>, %arg7: memref<64x32xf32, #tpu.memory_space<vmem>>, %arg8: memref<1x32xf32, #tpu.memory_space<vmem>>, %arg9: memref<32x64xf32, #tpu.memory_space<vmem>>, %arg10: memref<1x64xf32, #tpu.memory_space<vmem>>, %arg11: memref<64x32xf32, #tpu.memory_space<vmem>>, %arg12: memref<1x32xf32, #tpu.memory_space<vmem>>, %arg13: memref<32x32xf32, #tpu.memory_space<vmem>>, %arg14: memref<1x32xf32, #tpu.memory_space<vmem>>, %arg15: memref<32x32xf32, #tpu.memory_space<vmem>>, %arg16: memref<1x32xf32, #tpu.memory_space<vmem>>, %arg17: memref<32x32xf32, #tpu.memory_space<vmem>>, %arg18: memref<1x32xf32, #tpu.memory_space<vmem>>, %arg19: memref<32x32xf32, #tpu.memory_space<vmem>>, %arg20: memref<1x32xf32, #tpu.memory_space<vmem>>, %arg21: memref<1x32xf32, #tpu.memory_space<vmem>>, %arg22: memref<1x32xf32, #tpu.memory_space<vmem>>, %arg23: memref<32x64xf32, #tpu.memory_space<vmem>>, %arg24: memref<1x64xf32, #tpu.memory_space<vmem>>, %arg25: memref<64x32xf32, #tpu.memory_space<vmem>>, %arg26: memref<1x32xf32, #tpu.memory_space<vmem>>, %arg27: memref<1x1xf32, #tpu.memory_space<vmem>>, %arg28: memref<2x8x32xf32, #tpu.memory_space<vmem>>) attributes {dimension_semantics = [#tpu.dimension_semantics<parallel>], iteration_bounds = array<i64: 1>, scalar_prefetch = 0 : i64, scratch_operands = 0 : i64, tpu.core_type = #tpu.core_type<tc>, window_params = [{transform_indices = @transform_0, window_bounds = array<i64: 2, 8, 32>}, {transform_indices = @transform_1, window_bounds = array<i64: 2, 8, 32>}, {pipeline_mode = #tpu.pipeline_mode<synchronous>, transform_indices = @transform_2, window_bounds = array<i64: 1, 32>}, {pipeline_mode = #tpu.pipeline_mode<synchronous>, transform_indices = @transform_3, window_bounds = array<i64: 1, 32>}, {pipeline_mode = #tpu.pipeline_mode<synchronous>, transform_indices = @transform_4, window_bounds = array<i64: 96, 64>}, {pipeline_mode = #tpu.pipeline_mode<synchronous>, transform_indices = @transform_5, window_bounds = array<i64: 1, 64>}, {pipeline_mode = #tpu.pipeline_mode<synchronous>, transform_indices = @transform_6, window_bounds = array<i64: 64, 32>}, {pipeline_mode = #tpu.pipeline_mode<synchronous>, transform_indices = @transform_7, window_bounds = array<i64: 1, 32>}, {pipeline_mode = #tpu.pipeline_mode<synchronous>, transform_indices = @transform_8, window_bounds = array<i64: 32, 64>}, {pipeline_mode = #tpu.pipeline_mode<synchronous>, transform_indices = @transform_9, window_bounds = array<i64: 1, 64>}, {pipeline_mode = #tpu.pipeline_mode<synchronous>, transform_indices = @transform_10, window_bounds = array<i64: 64, 32>}, {pipeline_mode = #tpu.pipeline_mode<synchronous>, transform_indices = @transform_11, window_bounds = array<i64: 1, 32>}, {pipeline_mode = #tpu.pipeline_mode<synchronous>, transform_indices = @transform_12, window_bounds = array<i64: 32, 32>}, {pipeline_mode = #tpu.pipeline_mode<synchronous>, transform_indices = @transform_13, window_bounds = array<i64: 1, 32>}, {pipeline_mode = #tpu.pipeline_mode<synchronous>, transform_indices = @transform_14, window_bounds = array<i64: 32, 32>}, {pipeline_mode = #tpu.pipeline_mode<synchronous>, transform_indices = @transform_15, window_bounds = array<i64: 1, 32>}, {pipeline_mode = #tpu.pipeline_mode<synchronous>, transform_indices = @transform_16, window_bounds = array<i64: 32, 32>}, {pipeline_mode = #tpu.pipeline_mode<synchronous>, transform_indices = @transform_17, window_bounds = array<i64: 1, 32>}, {pipeline_mode = #tpu.pipeline_mode<synchronous>, transform_indices = @transform_18, window_bounds = array<i64: 32, 32>}, {pipeline_mode = #tpu.pipeline_mode<synchronous>, transform_indices = @transform_19, window_bounds = array<i64: 1, 32>}, {pipeline_mode = #tpu.pipeline_mode<synchronous>, transform_indices = @transform_20, window_bounds = array<i64: 1, 32>}, {pipeline_mode = #tpu.pipeline_mode<synchronous>, transform_indices = @transform_21, window_bounds = array<i64: 1, 32>}, {pipeline_mode = #tpu.pipeline_mode<synchronous>, transform_indices = @transform_22, window_bounds = array<i64: 32, 64>}, {pipeline_mode = #tpu.pipeline_mode<synchronous>, transform_indices = @transform_23, window_bounds = array<i64: 1, 64>}, {pipeline_mode = #tpu.pipeline_mode<synchronous>, transform_indices = @transform_24, window_bounds = array<i64: 64, 32>}, {pipeline_mode = #tpu.pipeline_mode<synchronous>, transform_indices = @transform_25, window_bounds = array<i64: 1, 32>}, {pipeline_mode = #tpu.pipeline_mode<synchronous>, transform_indices = @transform_26, window_bounds = array<i64: 1, 1>}, {transform_indices = @transform_27, window_bounds = array<i64: 2, 8, 32>}]} {
    %c0 = arith.constant 0 : index
    %c0_0 = arith.constant 0 : index
    %c0_1 = arith.constant 0 : index
    %0 = vector.load %arg1[%c0, %c0_0, %c0_1] : memref<2x8x32xf32, #tpu.memory_space<vmem>>, vector<2x8x32xf32>
    %1 = vector.shape_cast %0 : vector<2x8x32xf32> to vector<16x32xf32>
    %c0_2 = arith.constant 0 : index
    %c0_3 = arith.constant 0 : index
    %2 = vector.load %arg3[%c0_2, %c0_3] : memref<1x32xf32, #tpu.memory_space<vmem>>, vector<1x32xf32>
    %c0_4 = arith.constant 0 : index
    %c0_5 = arith.constant 0 : index
    %3 = vector.load %arg4[%c0_4, %c0_5] : memref<1x32xf32, #tpu.memory_space<vmem>>, vector<1x32xf32>
    %cst = arith.constant dense<0.000000e+00> : vector<16xf32>
    %4 = vector.multi_reduction <add>, %1, %cst [1] : vector<16x32xf32> to vector<16xf32>
    %5 = vector.shape_cast %4 : vector<16xf32> to vector<16x1xf32>
    %cst_6 = arith.constant 3.200000e+01 : f32
    %6 = vector.broadcast %cst_6 : f32 to vector<16x1xf32>
    %7 = arith.divf %5, %6 : vector<16x1xf32>
    %8 = vector.broadcast %7 : vector<16x1xf32> to vector<16x32xf32>
    %9 = arith.subf %1, %8 : vector<16x32xf32>
    %10 = arith.mulf %9, %9 : vector<16x32xf32>
    %cst_7 = arith.constant dense<0.000000e+00> : vector<16xf32>
    %11 = vector.multi_reduction <add>, %10, %cst_7 [1] : vector<16x32xf32> to vector<16xf32>
    %12 = vector.shape_cast %11 : vector<16xf32> to vector<16x1xf32>
    %cst_8 = arith.constant 3.200000e+01 : f32
    %13 = vector.broadcast %cst_8 : f32 to vector<16x1xf32>
    %14 = arith.divf %12, %13 : vector<16x1xf32>
    %15 = vector.broadcast %7 : vector<16x1xf32> to vector<16x32xf32>
    %16 = arith.subf %1, %15 : vector<16x32xf32>
    %cst_9 = arith.constant 9.99999974E-6 : f32
    %17 = vector.broadcast %cst_9 : f32 to vector<16x1xf32>
    %18 = arith.addf %14, %17 : vector<16x1xf32>
    %19 = math.rsqrt %18 : vector<16x1xf32>
    %20 = vector.broadcast %19 : vector<16x1xf32> to vector<16x32xf32>
    %21 = arith.mulf %16, %20 : vector<16x32xf32>
    %22 = vector.broadcast %2 : vector<1x32xf32> to vector<16x32xf32>
    %23 = arith.mulf %21, %22 : vector<16x32xf32>
    %24 = vector.broadcast %3 : vector<1x32xf32> to vector<16x32xf32>
    %25 = arith.addf %23, %24 : vector<16x32xf32>
    %26 = vector.shape_cast %25 : vector<16x32xf32> to vector<2x8x32xf32>
    %cst_10 = arith.constant 0.000000e+00 : f32
    %27 = vector.broadcast %cst_10 : f32 to vector<2x1x32xf32>
    %28 = vector.extract_strided_slice %26 {offsets = [0, 0, 0], sizes = [2, 7, 32], strides = [1, 1, 1]} : vector<2x8x32xf32> to vector<2x7x32xf32>
    %29 = tpu.concatenate %27, %28 in 1 : vector<2x1x32xf32>, vector<2x7x32xf32> -> vector<2x8x32xf32>
    %30 = vector.shape_cast %29 : vector<2x8x32xf32> to vector<16x32xf32>
    %31 = vector.extract_strided_slice %26 {offsets = [0, 1, 0], sizes = [2, 7, 32], strides = [1, 1, 1]} : vector<2x8x32xf32> to vector<2x7x32xf32>
    %32 = tpu.concatenate %31, %27 in 1 : vector<2x7x32xf32>, vector<2x1x32xf32> -> vector<2x8x32xf32>
    %33 = vector.shape_cast %32 : vector<2x8x32xf32> to vector<16x32xf32>
    %34 = tpu.concatenate %30, %25, %33 in 1 : vector<16x32xf32>, vector<16x32xf32>, vector<16x32xf32> -> vector<16x96xf32>
    %c0_11 = arith.constant 0 : index
    %c0_12 = arith.constant 0 : index
    %35 = vector.load %arg5[%c0_11, %c0_12] : memref<96x64xf32, #tpu.memory_space<vmem>>, vector<96x64xf32>
    %36 = arith.truncf %34 : vector<16x96xf32> to vector<16x96xbf16>
    %37 = arith.truncf %35 : vector<96x64xf32> to vector<96x64xbf16>
    %cst_13 = arith.constant dense<0.000000e+00> : vector<16x64xf32>
    %38 = tpu.matmul %36, %37, %cst_13 {dimension_numbers = #tpu.dot_dimension_numbers<[1], [0], [0], [1], [0, 0, 1, 1], [], []>} : vector<16x96xbf16>, vector<96x64xbf16>, vector<16x64xf32> -> vector<16x64xf32>
    %c0_14 = arith.constant 0 : index
    %c0_15 = arith.constant 0 : index
    %39 = vector.load %arg6[%c0_14, %c0_15] : memref<1x64xf32, #tpu.memory_space<vmem>>, vector<1x64xf32>
    %40 = vector.broadcast %39 : vector<1x64xf32> to vector<16x64xf32>
    %41 = arith.addf %38, %40 : vector<16x64xf32>
    %cst_16 = arith.constant 0.000000e+00 : f32
    %42 = vector.broadcast %cst_16 : f32 to vector<16x64xf32>
    %43 = arith.maximumf %41, %42 : vector<16x64xf32>
    %c0_17 = arith.constant 0 : index
    %c0_18 = arith.constant 0 : index
    %44 = vector.load %arg7[%c0_17, %c0_18] : memref<64x32xf32, #tpu.memory_space<vmem>>, vector<64x32xf32>
    %45 = arith.truncf %43 : vector<16x64xf32> to vector<16x64xbf16>
    %46 = arith.truncf %44 : vector<64x32xf32> to vector<64x32xbf16>
    %cst_19 = arith.constant dense<0.000000e+00> : vector<16x32xf32>
    %47 = tpu.matmul %45, %46, %cst_19 {dimension_numbers = #tpu.dot_dimension_numbers<[1], [0], [0], [1], [0, 0, 1, 1], [], []>} : vector<16x64xbf16>, vector<64x32xbf16>, vector<16x32xf32> -> vector<16x32xf32>
    %c0_20 = arith.constant 0 : index
    %c0_21 = arith.constant 0 : index
    %48 = vector.load %arg8[%c0_20, %c0_21] : memref<1x32xf32, #tpu.memory_space<vmem>>, vector<1x32xf32>
    %49 = vector.broadcast %48 : vector<1x32xf32> to vector<16x32xf32>
    %50 = arith.addf %47, %49 : vector<16x32xf32>
    %c0_22 = arith.constant 0 : index
    %c0_23 = arith.constant 0 : index
    %51 = vector.load %arg9[%c0_22, %c0_23] : memref<32x64xf32, #tpu.memory_space<vmem>>, vector<32x64xf32>
    %52 = arith.truncf %50 : vector<16x32xf32> to vector<16x32xbf16>
    %53 = arith.truncf %51 : vector<32x64xf32> to vector<32x64xbf16>
    %cst_24 = arith.constant dense<0.000000e+00> : vector<16x64xf32>
    %54 = tpu.matmul %52, %53, %cst_24 {dimension_numbers = #tpu.dot_dimension_numbers<[1], [0], [0], [1], [0, 0, 1, 1], [], []>} : vector<16x32xbf16>, vector<32x64xbf16>, vector<16x64xf32> -> vector<16x64xf32>
    %c0_25 = arith.constant 0 : index
    %c0_26 = arith.constant 0 : index
    %55 = vector.load %arg10[%c0_25, %c0_26] : memref<1x64xf32, #tpu.memory_space<vmem>>, vector<1x64xf32>
    %56 = vector.broadcast %55 : vector<1x64xf32> to vector<16x64xf32>
    %57 = arith.addf %54, %56 : vector<16x64xf32>
    %cst_27 = arith.constant 0.000000e+00 : f32
    %58 = vector.broadcast %cst_27 : f32 to vector<16x64xf32>
    %59 = arith.maximumf %57, %58 : vector<16x64xf32>
    %c0_28 = arith.constant 0 : index
    %c0_29 = arith.constant 0 : index
    %60 = vector.load %arg11[%c0_28, %c0_29] : memref<64x32xf32, #tpu.memory_space<vmem>>, vector<64x32xf32>
    %61 = arith.truncf %59 : vector<16x64xf32> to vector<16x64xbf16>
    %62 = arith.truncf %60 : vector<64x32xf32> to vector<64x32xbf16>
    %cst_30 = arith.constant dense<0.000000e+00> : vector<16x32xf32>
    %63 = tpu.matmul %61, %62, %cst_30 {dimension_numbers = #tpu.dot_dimension_numbers<[1], [0], [0], [1], [0, 0, 1, 1], [], []>} : vector<16x64xbf16>, vector<64x32xbf16>, vector<16x32xf32> -> vector<16x32xf32>
    %c0_31 = arith.constant 0 : index
    %c0_32 = arith.constant 0 : index
    %64 = vector.load %arg12[%c0_31, %c0_32] : memref<1x32xf32, #tpu.memory_space<vmem>>, vector<1x32xf32>
    %65 = vector.broadcast %64 : vector<1x32xf32> to vector<16x32xf32>
    %66 = arith.addf %63, %65 : vector<16x32xf32>
    %67 = math.tanh %66 : vector<16x32xf32>
    %c0_33 = arith.constant 0 : index
    %c0_34 = arith.constant 0 : index
    %c0_35 = arith.constant 0 : index
    %68 = vector.load %arg2[%c0_33, %c0_34, %c0_35] : memref<2x8x32xf32, #tpu.memory_space<vmem>>, vector<2x8x32xf32>
    %69 = vector.shape_cast %68 : vector<2x8x32xf32> to vector<16x32xf32>
    %c0_36 = arith.constant 0 : index
    %c0_37 = arith.constant 0 : index
    %70 = vector.load %arg27[%c0_36, %c0_37] : memref<1x1xf32, #tpu.memory_space<vmem>>, vector<1x1xf32>
    %71 = arith.negf %70 : vector<1x1xf32>
    %72 = math.exp %71 : vector<1x1xf32>
    %cst_38 = arith.constant 1.000000e+00 : f32
    %73 = vector.broadcast %cst_38 : f32 to vector<1x1xf32>
    %74 = arith.addf %73, %72 : vector<1x1xf32>
    %75 = arith.divf %73, %74 : vector<1x1xf32>
    %76 = vector.broadcast %75 : vector<1x1xf32> to vector<16x32xf32>
    %77 = arith.cmpf olt, %69, %76 : vector<16x32xf32>
    %78 = arith.extui %77 : vector<16x32xi1> to vector<16x32xi32>
    %79 = arith.sitofp %78 : vector<16x32xi32> to vector<16x32xf32>
    %80 = arith.mulf %67, %79 : vector<16x32xf32>
    %81 = arith.addf %25, %80 : vector<16x32xf32>
    %c0_39 = arith.constant 0 : index
    %c0_40 = arith.constant 0 : index
    %82 = vector.load %arg13[%c0_39, %c0_40] : memref<32x32xf32, #tpu.memory_space<vmem>>, vector<32x32xf32>
    %83 = arith.truncf %81 : vector<16x32xf32> to vector<16x32xbf16>
    %84 = arith.truncf %82 : vector<32x32xf32> to vector<32x32xbf16>
    %cst_41 = arith.constant dense<0.000000e+00> : vector<16x32xf32>
    %85 = tpu.matmul %83, %84, %cst_41 {dimension_numbers = #tpu.dot_dimension_numbers<[1], [0], [0], [1], [0, 0, 1, 1], [], []>} : vector<16x32xbf16>, vector<32x32xbf16>, vector<16x32xf32> -> vector<16x32xf32>
    %c0_42 = arith.constant 0 : index
    %c0_43 = arith.constant 0 : index
    %86 = vector.load %arg14[%c0_42, %c0_43] : memref<1x32xf32, #tpu.memory_space<vmem>>, vector<1x32xf32>
    %87 = vector.broadcast %86 : vector<1x32xf32> to vector<16x32xf32>
    %88 = arith.addf %85, %87 : vector<16x32xf32>
    %c0_44 = arith.constant 0 : index
    %c0_45 = arith.constant 0 : index
    %89 = vector.load %arg15[%c0_44, %c0_45] : memref<32x32xf32, #tpu.memory_space<vmem>>, vector<32x32xf32>
    %90 = arith.truncf %81 : vector<16x32xf32> to vector<16x32xbf16>
    %91 = arith.truncf %89 : vector<32x32xf32> to vector<32x32xbf16>
    %cst_46 = arith.constant dense<0.000000e+00> : vector<16x32xf32>
    %92 = tpu.matmul %90, %91, %cst_46 {dimension_numbers = #tpu.dot_dimension_numbers<[1], [0], [0], [1], [0, 0, 1, 1], [], []>} : vector<16x32xbf16>, vector<32x32xbf16>, vector<16x32xf32> -> vector<16x32xf32>
    %c0_47 = arith.constant 0 : index
    %c0_48 = arith.constant 0 : index
    %93 = vector.load %arg16[%c0_47, %c0_48] : memref<1x32xf32, #tpu.memory_space<vmem>>, vector<1x32xf32>
    %94 = vector.broadcast %93 : vector<1x32xf32> to vector<16x32xf32>
    %95 = arith.addf %92, %94 : vector<16x32xf32>
    %c0_49 = arith.constant 0 : index
    %c0_50 = arith.constant 0 : index
    %96 = vector.load %arg17[%c0_49, %c0_50] : memref<32x32xf32, #tpu.memory_space<vmem>>, vector<32x32xf32>
    %97 = arith.truncf %81 : vector<16x32xf32> to vector<16x32xbf16>
    %98 = arith.truncf %96 : vector<32x32xf32> to vector<32x32xbf16>
    %cst_51 = arith.constant dense<0.000000e+00> : vector<16x32xf32>
    %99 = tpu.matmul %97, %98, %cst_51 {dimension_numbers = #tpu.dot_dimension_numbers<[1], [0], [0], [1], [0, 0, 1, 1], [], []>} : vector<16x32xbf16>, vector<32x32xbf16>, vector<16x32xf32> -> vector<16x32xf32>
    %c0_52 = arith.constant 0 : index
    %c0_53 = arith.constant 0 : index
    %100 = vector.load %arg18[%c0_52, %c0_53] : memref<1x32xf32, #tpu.memory_space<vmem>>, vector<1x32xf32>
    %101 = vector.broadcast %100 : vector<1x32xf32> to vector<16x32xf32>
    %102 = arith.addf %99, %101 : vector<16x32xf32>
    %103 = vector.extract_strided_slice %88 {offsets = [0, 0], sizes = [16, 8], strides = [1, 1]} : vector<16x32xf32> to vector<16x8xf32>
    %104 = vector.shape_cast %103 : vector<16x8xf32> to vector<2x8x8xf32>
    %105 = vector.extract_strided_slice %95 {offsets = [0, 0], sizes = [16, 8], strides = [1, 1]} : vector<16x32xf32> to vector<16x8xf32>
    %106 = vector.shape_cast %105 : vector<16x8xf32> to vector<2x8x8xf32>
    %107 = vector.extract_strided_slice %102 {offsets = [0, 0], sizes = [16, 8], strides = [1, 1]} : vector<16x32xf32> to vector<16x8xf32>
    %108 = vector.shape_cast %107 : vector<16x8xf32> to vector<2x8x8xf32>
    %109 = arith.truncf %104 : vector<2x8x8xf32> to vector<2x8x8xbf16>
    %110 = arith.truncf %106 : vector<2x8x8xf32> to vector<2x8x8xbf16>
    "tpu.trace_start"() <{level = 10 : i32, message = "bqd,bkd->bqk"}> : () -> ()
    %cst_54 = arith.constant dense<0.000000e+00> : vector<2x8x8xf32>
    %111 = tpu.matmul %109, %110, %cst_54 {dimension_numbers = #tpu.dot_dimension_numbers<[2], [2], [1], [1], [0, 0, 0, 1, 1, 1], [0], [0]>} : vector<2x8x8xbf16>, vector<2x8x8xbf16>, vector<2x8x8xf32> -> vector<2x8x8xf32>
    "tpu.trace_stop"() : () -> ()
    %cst_55 = arith.constant 0.353553385 : f32
    %112 = vector.broadcast %cst_55 : f32 to vector<2x8x8xf32>
    %113 = arith.mulf %111, %112 : vector<2x8x8xf32>
    %cst_56 = arith.constant dense<0xFF800000> : vector<2x8xf32>
    %114 = vector.multi_reduction <maximumf>, %113, %cst_56 [2] : vector<2x8x8xf32> to vector<2x8xf32>
    %115 = vector.shape_cast %114 : vector<2x8xf32> to vector<2x8x1xf32>
    %116 = vector.broadcast %115 : vector<2x8x1xf32> to vector<2x8x8xf32>
    %117 = arith.subf %113, %116 : vector<2x8x8xf32>
    %118 = math.exp %117 : vector<2x8x8xf32>
    %cst_57 = arith.constant dense<0.000000e+00> : vector<2x8xf32>
    %119 = vector.multi_reduction <add>, %118, %cst_57 [2] : vector<2x8x8xf32> to vector<2x8xf32>
    %120 = vector.shape_cast %119 : vector<2x8xf32> to vector<2x8x1xf32>
    %121 = vector.broadcast %120 : vector<2x8x1xf32> to vector<2x8x8xf32>
    %122 = arith.divf %118, %121 : vector<2x8x8xf32>
    %123 = arith.truncf %122 : vector<2x8x8xf32> to vector<2x8x8xbf16>
    %124 = arith.truncf %108 : vector<2x8x8xf32> to vector<2x8x8xbf16>
    "tpu.trace_start"() <{level = 10 : i32, message = "bqk,bkd->bqd"}> : () -> ()
    %cst_58 = arith.constant dense<0.000000e+00> : vector<2x8x8xf32>
    %125 = tpu.matmul %123, %124, %cst_58 {dimension_numbers = #tpu.dot_dimension_numbers<[2], [1], [1], [2], [0, 0, 0, 1, 1, 2], [0], [0]>} : vector<2x8x8xbf16>, vector<2x8x8xbf16>, vector<2x8x8xf32> -> vector<2x8x8xf32>
    "tpu.trace_stop"() : () -> ()
    %126 = vector.extract_strided_slice %88 {offsets = [0, 8], sizes = [16, 8], strides = [1, 1]} : vector<16x32xf32> to vector<16x8xf32>
    %127 = vector.shape_cast %126 : vector<16x8xf32> to vector<2x8x8xf32>
    %128 = vector.extract_strided_slice %95 {offsets = [0, 8], sizes = [16, 8], strides = [1, 1]} : vector<16x32xf32> to vector<16x8xf32>
    %129 = vector.shape_cast %128 : vector<16x8xf32> to vector<2x8x8xf32>
    %130 = vector.extract_strided_slice %102 {offsets = [0, 8], sizes = [16, 8], strides = [1, 1]} : vector<16x32xf32> to vector<16x8xf32>
    %131 = vector.shape_cast %130 : vector<16x8xf32> to vector<2x8x8xf32>
    %132 = arith.truncf %127 : vector<2x8x8xf32> to vector<2x8x8xbf16>
    %133 = arith.truncf %129 : vector<2x8x8xf32> to vector<2x8x8xbf16>
    "tpu.trace_start"() <{level = 10 : i32, message = "bqd,bkd->bqk"}> : () -> ()
    %cst_59 = arith.constant dense<0.000000e+00> : vector<2x8x8xf32>
    %134 = tpu.matmul %132, %133, %cst_59 {dimension_numbers = #tpu.dot_dimension_numbers<[2], [2], [1], [1], [0, 0, 0, 1, 1, 1], [0], [0]>} : vector<2x8x8xbf16>, vector<2x8x8xbf16>, vector<2x8x8xf32> -> vector<2x8x8xf32>
    "tpu.trace_stop"() : () -> ()
    %cst_60 = arith.constant 0.353553385 : f32
    %135 = vector.broadcast %cst_60 : f32 to vector<2x8x8xf32>
    %136 = arith.mulf %134, %135 : vector<2x8x8xf32>
    %cst_61 = arith.constant dense<0xFF800000> : vector<2x8xf32>
    %137 = vector.multi_reduction <maximumf>, %136, %cst_61 [2] : vector<2x8x8xf32> to vector<2x8xf32>
    %138 = vector.shape_cast %137 : vector<2x8xf32> to vector<2x8x1xf32>
    %139 = vector.broadcast %138 : vector<2x8x1xf32> to vector<2x8x8xf32>
    %140 = arith.subf %136, %139 : vector<2x8x8xf32>
    %141 = math.exp %140 : vector<2x8x8xf32>
    %cst_62 = arith.constant dense<0.000000e+00> : vector<2x8xf32>
    %142 = vector.multi_reduction <add>, %141, %cst_62 [2] : vector<2x8x8xf32> to vector<2x8xf32>
    %143 = vector.shape_cast %142 : vector<2x8xf32> to vector<2x8x1xf32>
    %144 = vector.broadcast %143 : vector<2x8x1xf32> to vector<2x8x8xf32>
    %145 = arith.divf %141, %144 : vector<2x8x8xf32>
    %146 = arith.truncf %145 : vector<2x8x8xf32> to vector<2x8x8xbf16>
    %147 = arith.truncf %131 : vector<2x8x8xf32> to vector<2x8x8xbf16>
    "tpu.trace_start"() <{level = 10 : i32, message = "bqk,bkd->bqd"}> : () -> ()
    %cst_63 = arith.constant dense<0.000000e+00> : vector<2x8x8xf32>
    %148 = tpu.matmul %146, %147, %cst_63 {dimension_numbers = #tpu.dot_dimension_numbers<[2], [1], [1], [2], [0, 0, 0, 1, 1, 2], [0], [0]>} : vector<2x8x8xbf16>, vector<2x8x8xbf16>, vector<2x8x8xf32> -> vector<2x8x8xf32>
    "tpu.trace_stop"() : () -> ()
    %149 = vector.extract_strided_slice %88 {offsets = [0, 16], sizes = [16, 8], strides = [1, 1]} : vector<16x32xf32> to vector<16x8xf32>
    %150 = vector.shape_cast %149 : vector<16x8xf32> to vector<2x8x8xf32>
    %151 = vector.extract_strided_slice %95 {offsets = [0, 16], sizes = [16, 8], strides = [1, 1]} : vector<16x32xf32> to vector<16x8xf32>
    %152 = vector.shape_cast %151 : vector<16x8xf32> to vector<2x8x8xf32>
    %153 = vector.extract_strided_slice %102 {offsets = [0, 16], sizes = [16, 8], strides = [1, 1]} : vector<16x32xf32> to vector<16x8xf32>
    %154 = vector.shape_cast %153 : vector<16x8xf32> to vector<2x8x8xf32>
    %155 = arith.truncf %150 : vector<2x8x8xf32> to vector<2x8x8xbf16>
    %156 = arith.truncf %152 : vector<2x8x8xf32> to vector<2x8x8xbf16>
    "tpu.trace_start"() <{level = 10 : i32, message = "bqd,bkd->bqk"}> : () -> ()
    %cst_64 = arith.constant dense<0.000000e+00> : vector<2x8x8xf32>
    %157 = tpu.matmul %155, %156, %cst_64 {dimension_numbers = #tpu.dot_dimension_numbers<[2], [2], [1], [1], [0, 0, 0, 1, 1, 1], [0], [0]>} : vector<2x8x8xbf16>, vector<2x8x8xbf16>, vector<2x8x8xf32> -> vector<2x8x8xf32>
    "tpu.trace_stop"() : () -> ()
    %cst_65 = arith.constant 0.353553385 : f32
    %158 = vector.broadcast %cst_65 : f32 to vector<2x8x8xf32>
    %159 = arith.mulf %157, %158 : vector<2x8x8xf32>
    %cst_66 = arith.constant dense<0xFF800000> : vector<2x8xf32>
    %160 = vector.multi_reduction <maximumf>, %159, %cst_66 [2] : vector<2x8x8xf32> to vector<2x8xf32>
    %161 = vector.shape_cast %160 : vector<2x8xf32> to vector<2x8x1xf32>
    %162 = vector.broadcast %161 : vector<2x8x1xf32> to vector<2x8x8xf32>
    %163 = arith.subf %159, %162 : vector<2x8x8xf32>
    %164 = math.exp %163 : vector<2x8x8xf32>
    %cst_67 = arith.constant dense<0.000000e+00> : vector<2x8xf32>
    %165 = vector.multi_reduction <add>, %164, %cst_67 [2] : vector<2x8x8xf32> to vector<2x8xf32>
    %166 = vector.shape_cast %165 : vector<2x8xf32> to vector<2x8x1xf32>
    %167 = vector.broadcast %166 : vector<2x8x1xf32> to vector<2x8x8xf32>
    %168 = arith.divf %164, %167 : vector<2x8x8xf32>
    %169 = arith.truncf %168 : vector<2x8x8xf32> to vector<2x8x8xbf16>
    %170 = arith.truncf %154 : vector<2x8x8xf32> to vector<2x8x8xbf16>
    "tpu.trace_start"() <{level = 10 : i32, message = "bqk,bkd->bqd"}> : () -> ()
    %cst_68 = arith.constant dense<0.000000e+00> : vector<2x8x8xf32>
    %171 = tpu.matmul %169, %170, %cst_68 {dimension_numbers = #tpu.dot_dimension_numbers<[2], [1], [1], [2], [0, 0, 0, 1, 1, 2], [0], [0]>} : vector<2x8x8xbf16>, vector<2x8x8xbf16>, vector<2x8x8xf32> -> vector<2x8x8xf32>
    "tpu.trace_stop"() : () -> ()
    %172 = vector.extract_strided_slice %88 {offsets = [0, 24], sizes = [16, 8], strides = [1, 1]} : vector<16x32xf32> to vector<16x8xf32>
    %173 = vector.shape_cast %172 : vector<16x8xf32> to vector<2x8x8xf32>
    %174 = vector.extract_strided_slice %95 {offsets = [0, 24], sizes = [16, 8], strides = [1, 1]} : vector<16x32xf32> to vector<16x8xf32>
    %175 = vector.shape_cast %174 : vector<16x8xf32> to vector<2x8x8xf32>
    %176 = vector.extract_strided_slice %102 {offsets = [0, 24], sizes = [16, 8], strides = [1, 1]} : vector<16x32xf32> to vector<16x8xf32>
    %177 = vector.shape_cast %176 : vector<16x8xf32> to vector<2x8x8xf32>
    %178 = arith.truncf %173 : vector<2x8x8xf32> to vector<2x8x8xbf16>
    %179 = arith.truncf %175 : vector<2x8x8xf32> to vector<2x8x8xbf16>
    "tpu.trace_start"() <{level = 10 : i32, message = "bqd,bkd->bqk"}> : () -> ()
    %cst_69 = arith.constant dense<0.000000e+00> : vector<2x8x8xf32>
    %180 = tpu.matmul %178, %179, %cst_69 {dimension_numbers = #tpu.dot_dimension_numbers<[2], [2], [1], [1], [0, 0, 0, 1, 1, 1], [0], [0]>} : vector<2x8x8xbf16>, vector<2x8x8xbf16>, vector<2x8x8xf32> -> vector<2x8x8xf32>
    "tpu.trace_stop"() : () -> ()
    %cst_70 = arith.constant 0.353553385 : f32
    %181 = vector.broadcast %cst_70 : f32 to vector<2x8x8xf32>
    %182 = arith.mulf %180, %181 : vector<2x8x8xf32>
    %cst_71 = arith.constant dense<0xFF800000> : vector<2x8xf32>
    %183 = vector.multi_reduction <maximumf>, %182, %cst_71 [2] : vector<2x8x8xf32> to vector<2x8xf32>
    %184 = vector.shape_cast %183 : vector<2x8xf32> to vector<2x8x1xf32>
    %185 = vector.broadcast %184 : vector<2x8x1xf32> to vector<2x8x8xf32>
    %186 = arith.subf %182, %185 : vector<2x8x8xf32>
    %187 = math.exp %186 : vector<2x8x8xf32>
    %cst_72 = arith.constant dense<0.000000e+00> : vector<2x8xf32>
    %188 = vector.multi_reduction <add>, %187, %cst_72 [2] : vector<2x8x8xf32> to vector<2x8xf32>
    %189 = vector.shape_cast %188 : vector<2x8xf32> to vector<2x8x1xf32>
    %190 = vector.broadcast %189 : vector<2x8x1xf32> to vector<2x8x8xf32>
    %191 = arith.divf %187, %190 : vector<2x8x8xf32>
    %192 = arith.truncf %191 : vector<2x8x8xf32> to vector<2x8x8xbf16>
    %193 = arith.truncf %177 : vector<2x8x8xf32> to vector<2x8x8xbf16>
    "tpu.trace_start"() <{level = 10 : i32, message = "bqk,bkd->bqd"}> : () -> ()
    %cst_73 = arith.constant dense<0.000000e+00> : vector<2x8x8xf32>
    %194 = tpu.matmul %192, %193, %cst_73 {dimension_numbers = #tpu.dot_dimension_numbers<[2], [1], [1], [2], [0, 0, 0, 1, 1, 2], [0], [0]>} : vector<2x8x8xbf16>, vector<2x8x8xbf16>, vector<2x8x8xf32> -> vector<2x8x8xf32>
    "tpu.trace_stop"() : () -> ()
    %195 = tpu.concatenate %125, %148, %171, %194 in 2 : vector<2x8x8xf32>, vector<2x8x8xf32>, vector<2x8x8xf32>, vector<2x8x8xf32> -> vector<2x8x32xf32>
    %196 = vector.shape_cast %195 : vector<2x8x32xf32> to vector<16x32xf32>
    %c0_74 = arith.constant 0 : index
    %c0_75 = arith.constant 0 : index
    %197 = vector.load %arg19[%c0_74, %c0_75] : memref<32x32xf32, #tpu.memory_space<vmem>>, vector<32x32xf32>
    %198 = arith.truncf %196 : vector<16x32xf32> to vector<16x32xbf16>
    %199 = arith.truncf %197 : vector<32x32xf32> to vector<32x32xbf16>
    %cst_76 = arith.constant dense<0.000000e+00> : vector<16x32xf32>
    %200 = tpu.matmul %198, %199, %cst_76 {dimension_numbers = #tpu.dot_dimension_numbers<[1], [0], [0], [1], [0, 0, 1, 1], [], []>} : vector<16x32xbf16>, vector<32x32xbf16>, vector<16x32xf32> -> vector<16x32xf32>
    %c0_77 = arith.constant 0 : index
    %c0_78 = arith.constant 0 : index
    %201 = vector.load %arg20[%c0_77, %c0_78] : memref<1x32xf32, #tpu.memory_space<vmem>>, vector<1x32xf32>
    %202 = vector.broadcast %201 : vector<1x32xf32> to vector<16x32xf32>
    %203 = arith.addf %200, %202 : vector<16x32xf32>
    %204 = arith.addf %1, %203 : vector<16x32xf32>
    %c0_79 = arith.constant 0 : index
    %c0_80 = arith.constant 0 : index
    %205 = vector.load %arg21[%c0_79, %c0_80] : memref<1x32xf32, #tpu.memory_space<vmem>>, vector<1x32xf32>
    %c0_81 = arith.constant 0 : index
    %c0_82 = arith.constant 0 : index
    %206 = vector.load %arg22[%c0_81, %c0_82] : memref<1x32xf32, #tpu.memory_space<vmem>>, vector<1x32xf32>
    %cst_83 = arith.constant dense<0.000000e+00> : vector<16xf32>
    %207 = vector.multi_reduction <add>, %204, %cst_83 [1] : vector<16x32xf32> to vector<16xf32>
    %208 = vector.shape_cast %207 : vector<16xf32> to vector<16x1xf32>
    %cst_84 = arith.constant 3.200000e+01 : f32
    %209 = vector.broadcast %cst_84 : f32 to vector<16x1xf32>
    %210 = arith.divf %208, %209 : vector<16x1xf32>
    %211 = vector.broadcast %210 : vector<16x1xf32> to vector<16x32xf32>
    %212 = arith.subf %204, %211 : vector<16x32xf32>
    %213 = arith.mulf %212, %212 : vector<16x32xf32>
    %cst_85 = arith.constant dense<0.000000e+00> : vector<16xf32>
    %214 = vector.multi_reduction <add>, %213, %cst_85 [1] : vector<16x32xf32> to vector<16xf32>
    %215 = vector.shape_cast %214 : vector<16xf32> to vector<16x1xf32>
    %cst_86 = arith.constant 3.200000e+01 : f32
    %216 = vector.broadcast %cst_86 : f32 to vector<16x1xf32>
    %217 = arith.divf %215, %216 : vector<16x1xf32>
    %218 = vector.broadcast %210 : vector<16x1xf32> to vector<16x32xf32>
    %219 = arith.subf %204, %218 : vector<16x32xf32>
    %cst_87 = arith.constant 9.99999974E-6 : f32
    %220 = vector.broadcast %cst_87 : f32 to vector<16x1xf32>
    %221 = arith.addf %217, %220 : vector<16x1xf32>
    %222 = math.rsqrt %221 : vector<16x1xf32>
    %223 = vector.broadcast %222 : vector<16x1xf32> to vector<16x32xf32>
    %224 = arith.mulf %219, %223 : vector<16x32xf32>
    %225 = vector.broadcast %205 : vector<1x32xf32> to vector<16x32xf32>
    %226 = arith.mulf %224, %225 : vector<16x32xf32>
    %227 = vector.broadcast %206 : vector<1x32xf32> to vector<16x32xf32>
    %228 = arith.addf %226, %227 : vector<16x32xf32>
    %c0_88 = arith.constant 0 : index
    %c0_89 = arith.constant 0 : index
    %229 = vector.load %arg23[%c0_88, %c0_89] : memref<32x64xf32, #tpu.memory_space<vmem>>, vector<32x64xf32>
    %230 = arith.truncf %228 : vector<16x32xf32> to vector<16x32xbf16>
    %231 = arith.truncf %229 : vector<32x64xf32> to vector<32x64xbf16>
    %cst_90 = arith.constant dense<0.000000e+00> : vector<16x64xf32>
    %232 = tpu.matmul %230, %231, %cst_90 {dimension_numbers = #tpu.dot_dimension_numbers<[1], [0], [0], [1], [0, 0, 1, 1], [], []>} : vector<16x32xbf16>, vector<32x64xbf16>, vector<16x64xf32> -> vector<16x64xf32>
    %c0_91 = arith.constant 0 : index
    %c0_92 = arith.constant 0 : index
    %233 = vector.load %arg24[%c0_91, %c0_92] : memref<1x64xf32, #tpu.memory_space<vmem>>, vector<1x64xf32>
    %234 = vector.broadcast %233 : vector<1x64xf32> to vector<16x64xf32>
    %235 = arith.addf %232, %234 : vector<16x64xf32>
    %cst_93 = arith.constant 0.000000e+00 : f32
    %236 = vector.broadcast %cst_93 : f32 to vector<16x64xf32>
    %237 = arith.maximumf %235, %236 : vector<16x64xf32>
    %c0_94 = arith.constant 0 : index
    %c0_95 = arith.constant 0 : index
    %238 = vector.load %arg25[%c0_94, %c0_95] : memref<64x32xf32, #tpu.memory_space<vmem>>, vector<64x32xf32>
    %239 = arith.truncf %237 : vector<16x64xf32> to vector<16x64xbf16>
    %240 = arith.truncf %238 : vector<64x32xf32> to vector<64x32xbf16>
    %cst_96 = arith.constant dense<0.000000e+00> : vector<16x32xf32>
    %241 = tpu.matmul %239, %240, %cst_96 {dimension_numbers = #tpu.dot_dimension_numbers<[1], [0], [0], [1], [0, 0, 1, 1], [], []>} : vector<16x64xbf16>, vector<64x32xbf16>, vector<16x32xf32> -> vector<16x32xf32>
    %c0_97 = arith.constant 0 : index
    %c0_98 = arith.constant 0 : index
    %242 = vector.load %arg26[%c0_97, %c0_98] : memref<1x32xf32, #tpu.memory_space<vmem>>, vector<1x32xf32>
    %243 = vector.broadcast %242 : vector<1x32xf32> to vector<16x32xf32>
    %244 = arith.addf %241, %243 : vector<16x32xf32>
    %245 = arith.addf %204, %244 : vector<16x32xf32>
    %246 = vector.shape_cast %245 : vector<16x32xf32> to vector<2x8x32xf32>
    %c0_99 = arith.constant 0 : index
    %c0_100 = arith.constant 0 : index
    %c0_101 = arith.constant 0 : index
    %247 = vector.load %arg28[%c0_99, %c0_100, %c0_101] : memref<2x8x32xf32, #tpu.memory_space<vmem>>, vector<2x8x32xf32>
    tpu.vector_store %arg28[%c0_99, %c0_100, %c0_101], %246 {strides = array<i32>} : memref<2x8x32xf32, #tpu.memory_space<vmem>>, vector<2x8x32xf32>,
    return
  }
  func.func @transform_0(%arg0: i32) -> (i32, i32, i32) {
    %c0_i32 = arith.constant 0 : i32
    %c0_i32_0 = arith.constant 0 : i32
    %c0_i32_1 = arith.constant 0 : i32
    return %arg0, %c0_i32, %c0_i32_0 : i32, i32, i32
  }
  func.func @transform_1(%arg0: i32) -> (i32, i32, i32) {
    %c0_i32 = arith.constant 0 : i32
    %c0_i32_0 = arith.constant 0 : i32
    %c0_i32_1 = arith.constant 0 : i32
    return %arg0, %c0_i32, %c0_i32_0 : i32, i32, i32
  }
  func.func @transform_2(%arg0: i32) -> (i32, i32) {
    %c0_i32 = arith.constant 0 : i32
    %c0_i32_0 = arith.constant 0 : i32
    %c0_i32_1 = arith.constant 0 : i32
    return %c0_i32, %c0_i32_0 : i32, i32
  }
  func.func @transform_3(%arg0: i32) -> (i32, i32) {
    %c0_i32 = arith.constant 0 : i32
    %c0_i32_0 = arith.constant 0 : i32
    %c0_i32_1 = arith.constant 0 : i32
    return %c0_i32, %c0_i32_0 : i32, i32
  }
  func.func @transform_4(%arg0: i32) -> (i32, i32) {
    %c0_i32 = arith.constant 0 : i32
    %c0_i32_0 = arith.constant 0 : i32
    %c0_i32_1 = arith.constant 0 : i32
    return %c0_i32, %c0_i32_0 : i32, i32
  }
  func.func @transform_5(%arg0: i32) -> (i32, i32) {
    %c0_i32 = arith.constant 0 : i32
    %c0_i32_0 = arith.constant 0 : i32
    %c0_i32_1 = arith.constant 0 : i32
    return %c0_i32, %c0_i32_0 : i32, i32
  }
  func.func @transform_6(%arg0: i32) -> (i32, i32) {
    %c0_i32 = arith.constant 0 : i32
    %c0_i32_0 = arith.constant 0 : i32
    %c0_i32_1 = arith.constant 0 : i32
    return %c0_i32, %c0_i32_0 : i32, i32
  }
  func.func @transform_7(%arg0: i32) -> (i32, i32) {
    %c0_i32 = arith.constant 0 : i32
    %c0_i32_0 = arith.constant 0 : i32
    %c0_i32_1 = arith.constant 0 : i32
    return %c0_i32, %c0_i32_0 : i32, i32
  }
  func.func @transform_8(%arg0: i32) -> (i32, i32) {
    %c0_i32 = arith.constant 0 : i32
    %c0_i32_0 = arith.constant 0 : i32
    %c0_i32_1 = arith.constant 0 : i32
    return %c0_i32, %c0_i32_0 : i32, i32
  }
  func.func @transform_9(%arg0: i32) -> (i32, i32) {
    %c0_i32 = arith.constant 0 : i32
    %c0_i32_0 = arith.constant 0 : i32
    %c0_i32_1 = arith.constant 0 : i32
    return %c0_i32, %c0_i32_0 : i32, i32
  }
  func.func @transform_10(%arg0: i32) -> (i32, i32) {
    %c0_i32 = arith.constant 0 : i32
    %c0_i32_0 = arith.constant 0 : i32
    %c0_i32_1 = arith.constant 0 : i32
    return %c0_i32, %c0_i32_0 : i32, i32
  }
  func.func @transform_11(%arg0: i32) -> (i32, i32) {
    %c0_i32 = arith.constant 0 : i32
    %c0_i32_0 = arith.constant 0 : i32
    %c0_i32_1 = arith.constant 0 : i32
    return %c0_i32, %c0_i32_0 : i32, i32
  }
  func.func @transform_12(%arg0: i32) -> (i32, i32) {
    %c0_i32 = arith.constant 0 : i32
    %c0_i32_0 = arith.constant 0 : i32
    %c0_i32_1 = arith.constant 0 : i32
    return %c0_i32, %c0_i32_0 : i32, i32
  }
  func.func @transform_13(%arg0: i32) -> (i32, i32) {
    %c0_i32 = arith.constant 0 : i32
    %c0_i32_0 = arith.constant 0 : i32
    %c0_i32_1 = arith.constant 0 : i32
    return %c0_i32, %c0_i32_0 : i32, i32
  }
  func.func @transform_14(%arg0: i32) -> (i32, i32) {
    %c0_i32 = arith.constant 0 : i32
    %c0_i32_0 = arith.constant 0 : i32
    %c0_i32_1 = arith.constant 0 : i32
    return %c0_i32, %c0_i32_0 : i32, i32
  }
  func.func @transform_15(%arg0: i32) -> (i32, i32) {
    %c0_i32 = arith.constant 0 : i32
    %c0_i32_0 = arith.constant 0 : i32
    %c0_i32_1 = arith.constant 0 : i32
    return %c0_i32, %c0_i32_0 : i32, i32
  }
  func.func @transform_16(%arg0: i32) -> (i32, i32) {
    %c0_i32 = arith.constant 0 : i32
    %c0_i32_0 = arith.constant 0 : i32
    %c0_i32_1 = arith.constant 0 : i32
    return %c0_i32, %c0_i32_0 : i32, i32
  }
  func.func @transform_17(%arg0: i32) -> (i32, i32) {
    %c0_i32 = arith.constant 0 : i32
    %c0_i32_0 = arith.constant 0 : i32
    %c0_i32_1 = arith.constant 0 : i32
    return %c0_i32, %c0_i32_0 : i32, i32
  }
  func.func @transform_18(%arg0: i32) -> (i32, i32) {
    %c0_i32 = arith.constant 0 : i32
    %c0_i32_0 = arith.constant 0 : i32
    %c0_i32_1 = arith.constant 0 : i32
    return %c0_i32, %c0_i32_0 : i32, i32
  }
  func.func @transform_19(%arg0: i32) -> (i32, i32) {
    %c0_i32 = arith.constant 0 : i32
    %c0_i32_0 = arith.constant 0 : i32
    %c0_i32_1 = arith.constant 0 : i32
    return %c0_i32, %c0_i32_0 : i32, i32
  }
  func.func @transform_20(%arg0: i32) -> (i32, i32) {
    %c0_i32 = arith.constant 0 : i32
    %c0_i32_0 = arith.constant 0 : i32
    %c0_i32_1 = arith.constant 0 : i32
    return %c0_i32, %c0_i32_0 : i32, i32
  }
  func.func @transform_21(%arg0: i32) -> (i32, i32) {
    %c0_i32 = arith.constant 0 : i32
    %c0_i32_0 = arith.constant 0 : i32
    %c0_i32_1 = arith.constant 0 : i32
    return %c0_i32, %c0_i32_0 : i32, i32
  }
  func.func @transform_22(%arg0: i32) -> (i32, i32) {
    %c0_i32 = arith.constant 0 : i32
    %c0_i32_0 = arith.constant 0 : i32
    %c0_i32_1 = arith.constant 0 : i32
    return %c0_i32, %c0_i32_0 : i32, i32
  }
  func.func @transform_23(%arg0: i32) -> (i32, i32) {
    %c0_i32 = arith.constant 0 : i32
    %c0_i32_0 = arith.constant 0 : i32
    %c0_i32_1 = arith.constant 0 : i32
    return %c0_i32, %c0_i32_0 : i32, i32
  }
  func.func @transform_24(%arg0: i32) -> (i32, i32) {
    %c0_i32 = arith.constant 0 : i32
    %c0_i32_0 = arith.constant 0 : i32
    %c0_i32_1 = arith.constant 0 : i32
    return %c0_i32, %c0_i32_0 : i32, i32
  }
  func.func @transform_25(%arg0: i32) -> (i32, i32) {
    %c0_i32 = arith.constant 0 : i32
    %c0_i32_0 = arith.constant 0 : i32
    %c0_i32_1 = arith.constant 0 : i32
    return %c0_i32, %c0_i32_0 : i32, i32
  }
  func.func @transform_26(%arg0: i32) -> (i32, i32) {
    %c0_i32 = arith.constant 0 : i32
    %c0_i32_0 = arith.constant 0 : i32
    %c0_i32_1 = arith.constant 0 : i32
    return %c0_i32, %c0_i32_0 : i32, i32
  }
  func.func @transform_27(%arg0: i32) -> (i32, i32, i32) {
    %c0_i32 = arith.constant 0 : i32
    %c0_i32_0 = arith.constant 0 : i32
    %c0_i32_1 = arith.constant 0 : i32
    return %arg0, %c0_i32, %c0_i32_0 : i32, i32, i32
  }
}

</mosaic_0001>

<bundles_post_ra>
// kernel: tpu_custom_call.1
= control target key start
LH: loop header
LB: loop body
LE: loop exit
PB: predicated region body
PF: predicated region fallthrough
CT: control target
= control target key end

     0   :  { %s1973_s0 = inlined_call_operand.vmem [shape: f32[2,8,32], index: 0, kind: input, shape index: {}]   ;;  %s1974_s1 = inlined_call_operand.vmem [shape: f32[2,8,32], index: 1, kind: input, shape index: {}]   ;;  %s1975_s2 = inlined_call_operand.vmem [shape: f32[1,32], index: 2, kind: input, shape index: {}]   ;;  %s1976_s3 = inlined_call_operand.vmem [shape: f32[1,32], index: 3, kind: input, shape index: {}]   ;;  %s1977_s4 = inlined_call_operand.vmem [shape: f32[96,64], index: 4, kind: input, shape index: {}]   ;;  %s1978_s5 = inlined_call_operand.vmem [shape: f32[1,64], index: 5, kind: input, shape index: {}]   ;;  %s1979_s6 = inlined_call_operand.vmem [shape: f32[64,32], index: 6, kind: input, shape index: {}]   ;;  %s1980_s7 = inlined_call_operand.vmem [shape: f32[1,32], index: 7, kind: input, shape index: {}]   ;;  %s1981_s8 = inlined_call_operand.vmem [shape: f32[32,64], index: 8, kind: input, shape index: {}]   ;;  %s1982_s9 = inlined_call_operand.vmem [shape: f32[1,64], index: 9, kind: input, shape index: {}]   ;;  %s1983_s10 = inlined_call_operand.vmem [shape: f32[64,32], index: 10, kind: input, shape index: {}]   ;;  %s1984_s11 = inlined_call_operand.vmem [shape: f32[1,32], index: 11, kind: input, shape index: {}]   ;;  %s1985_s12 = inlined_call_operand.vmem [shape: f32[32,32], index: 12, kind: input, shape index: {}]   ;;  %s1986_s13 = inlined_call_operand.vmem [shape: f32[1,32], index: 13, kind: input, shape index: {}]   ;;  %s1987_s14 = inlined_call_operand.vmem [shape: f32[32,32], index: 14, kind: input, shape index: {}]   ;;  %s1988_s15 = inlined_call_operand.vmem [shape: f32[1,32], index: 15, kind: input, shape index: {}]   ;;  %s1989_s16 = inlined_call_operand.vmem [shape: f32[32,32], index: 16, kind: input, shape index: {}]   ;;  %s1990_s17 = inlined_call_operand.vmem [shape: f32[1,32], index: 17, kind: input, shape index: {}]   ;;  %s1991_s18 = inlined_call_operand.vmem [shape: f32[32,32], index: 18, kind: input, shape index: {}]   ;;  %s1992_s19 = inlined_call_operand.vmem [shape: f32[1,32], index: 19, kind: input, shape index: {}]   ;;  %s1993_s20 = inlined_call_operand.vmem [shape: f32[1,32], index: 20, kind: input, shape index: {}]   ;;  %s1994_s21 = inlined_call_operand.vmem [shape: f32[1,32], index: 21, kind: input, shape index: {}]   ;;  %s1995_s22 = inlined_call_operand.vmem [shape: f32[32,64], index: 22, kind: input, shape index: {}]   ;;  %s1996_s23 = inlined_call_operand.vmem [shape: f32[1,64], index: 23, kind: input, shape index: {}]   ;;  %s1997_s24 = inlined_call_operand.vmem [shape: f32[64,32], index: 24, kind: input, shape index: {}]   ;;  %s1998_s25 = inlined_call_operand.vmem [shape: f32[1,32], index: 25, kind: input, shape index: {}]   ;;  %s1999_s26 = inlined_call_operand.<no memory space> [shape: f32[1,1], index: 26, kind: input, shape index: {}]   ;;  %s2000_s27 = inlined_call_operand.hbm [shape: f32[2,8,32], index: 27, kind: output, shape index: {}]  }
   0x1   :  { %2007 = sst [smem:[#allocation6_spill]] %s1973_s0  ;;  %v32_v0 = vstv %s1999_s26 }
   0x2   :  { %2008 = sst [smem:[#allocation7_spill]] %s1974_s1  ;;  %33 = vst [vmem:[#allocation2] sm:$0x1] %v32_v0 }
   0x3   :  { %2009 = sst [smem:[#allocation8_spill]] %s1975_s2 }
   0x4   :  { %2010 = sst [smem:[#allocation9_spill]] %s1976_s3 }
   0x5   :  { %2011 = sst [smem:[#allocation10_spill]] %s1977_s4 }
   0x6   :  { %2012 = sst [smem:[#allocation11_spill]] %s1978_s5 }
   0x7   :  { %2013 = sst [smem:[#allocation12_spill]] %s1979_s6 }
   0x8   :  { %2014 = sst [smem:[#allocation13_spill]] %s1980_s7 }
   0x9   :  { %2015 = sst [smem:[#allocation14_spill]] %s1981_s8 }
   0xa   :  { %2016 = sst [smem:[#allocation15_spill]] %s1982_s9 }
   0xb   :  { %2017 = sst [smem:[#allocation16_spill]] %s1983_s10 }
   0xc   :  { %2018 = sst [smem:[#allocation17_spill]] %s1984_s11 }
   0xd   :  { %s2019_s9 = sld [smem:[#allocation6_spill]]  ;;  %vm94_vm0 = vcmask 261120  }
  0x13   :  { %v90_v1 = vld [vmem:[%s2019_s9] sm:$0xff]  ;;  %v91_v3 = vld [vmem:[%s2019_s9 + $0x8] sm:$0xff] }
  0x14   :  { %v95_v2 = vsel %vm94_vm0, %v90_v1, 0.0 }
  0x15   :  { %96 = vadd.xlane.f32.xlu0 %v95_v2 }
  0x16   :  { %34 = vsyncpa [#allocation4], 0  ;;  %v98_v4 = vsel %vm94_vm0, %v91_v3, 0.0  ;;  %v1386_v5 = vmov 32.0   ;;  %s2020_s10 = sld [smem:[#allocation10_spill]]  ;;  %s1387_s6 = smov 32  }
  0x17   :  { %1308 = vrcp.f32 %v1386_v5  ;;  %s2021_s26 = sld [smem:[#allocation8_spill]]  ;;  %vm169_vm8 = vcmask 1046528   ;;  %s1388_s11 = smov 64   ;;  %vm162_vm9 = vcmask 1040384   ;;  %vm188_vm10 = vcmask 523264  }
  0x18   :  { %s2022_s1 = sld [smem:[#allocation9_spill]]  ;;  %vm214_vm11 = vcmask 785408   ;;  %s1394_s0 = smov 8  }
  0x19   :  { %s2024_s7 = sld [smem:[#allocation11_spill]]  ;;  %s1395_s29 = smov 16  }
  0x1a   :  { %s2025_s30 = sld [smem:[#allocation14_spill]] }
  0x1b   :  { %s2028_s8 = sld [smem:[#allocation15_spill]] }
  0x1c   :  { %v201_v31 = vld [vmem:[%s2020_s10 + $0x50] sm:$0xff]  ;;  %v202_v32 = vld [vmem:[%s2020_s10 + $0x58] sm:$0xff]  ;;  %v199_v33 = vld [vmem:[%s2020_s10 + $0x40] sm:$0xff]  ;;  %s2029_s2 = sld [smem:[#allocation17_spill]] }
  0x1d   :  { %99 = vadd.xlane.f32.xlu0 %v98_v4  ;;  %v1309_v6 = vpop.eup %1308  ;;  %v209_v35 = vpack.c.bf16 %v202_v32, %v201_v31  ;;  %v200_v36 = vld [vmem:[%s2020_s10 + $0x48] sm:$0xff]  ;;  %v197_v40 = vld [vmem:[%s2020_s10 + $0x30] sm:$0xff]  ;;  %v198_v41 = vld [vmem:[%s2020_s10 + $0x38] sm:$0xff] }
  0x1e   :  { %v102_v7 = vmul.f32 32.0, %v1309_v6  ;;  %vm106_vm1 = vweird.f32 %v1309_v6  ;;  %v208_v38 = vpack.c.bf16 %v200_v36, %v199_v33  ;;  %v207_v45 = vpack.c.bf16 %v198_v41, %v197_v40  ;;  %v1294_v50 = vld [vmem:[%s2021_s26] ss:$0 sm:$0xff]  ;;  %v196_v2 = vld [vmem:[%s2020_s10 + $0x28] sm:$0xff]  ;;  %v193_v4 = vld [vmem:[%s2020_s10 + $0x10] sm:$0xff] }
  0x1f   :  { %220 = vmatpush.bf16.msra.mxu0 %v209_v35  ;;  %v1295_v55 = vld [vmem:[%s2022_s1] ss:$0 sm:$0xff]  ;;  %v194_v5 = vld [vmem:[%s2020_s10 + $0x18] sm:$0xff]  ;;  %s1396_s1 = smov 24  }
  0x20   :  { %v103_v8 = vsub.f32 1.0, %v102_v7  ;;  %v191_v7 = vld [vmem:[%s2020_s10] sm:$0xff] }
  0x22   :  { %v104_v9 = vmul.f32 %v1309_v6, %v103_v8  ;;  %v192_v8 = vld [vmem:[%s2020_s10 + $0x8] sm:$0xff] }
  0x23   :  { %221 = vmatpush.bf16.msra.mxu0 %v208_v38 }
  0x24   :  { %v105_v10 = vadd.f32 %v1309_v6, %v104_v9  ;;  %v204_v9 = vpack.c.bf16 %v192_v8, %v191_v7 }
  0x26   :  { %v1550_v11 = vsel %vm106_vm1, %v1309_v6, %v105_v10  ;;  %v205_v6 = vpack.c.bf16 %v194_v5, %v193_v4  ;;  %v336_v5 = vld [vmem:[#allocation2] sm:$0x1] }
  0x27   :  { %222 = vmatpush.bf16.msra.mxu0 %v207_v45  ;;  %v1230_v8 = vmul.f32 -1.442695, %v336_v5 }
  0x88   :  { %v97_v12 = vpop.xlane.xlu0 %96 }
  0x89   :  { %v108_v13 = vmul.f32 %v1550_v11, %v97_v12 }
  0x8b   :  { %v110_v14 = vsub.f32 %v90_v1, %v108_v13  ;;  %v195_v1 = vld [vmem:[%s2020_s10 + $0x20] sm:$0xff] }
  0x8d   :  { %v112_v15 = vmul.f32 %v110_v14, %v110_v14 }
  0x8f   :  { %v114_v16 = vsel %vm94_vm0, %v112_v15, 0.0 }
  0x90   :  { %115 = vadd.xlane.f32.xlu1 %v114_v16  ;;  %v100_v17 = vpop.xlane.xlu0 %99 }
  0x91   :  { %v109_v18 = vmul.f32 %v1550_v11, %v100_v17 }
  0x93   :  { %v111_v19 = vsub.f32 %v91_v3, %v109_v18  ;;  %v206_v3 = vpack.c.bf16 %v196_v2, %v195_v1 }
  0x95   :  { %v113_v20 = vmul.f32 %v111_v19, %v111_v19  ;;  %223 = vmatpush.bf16.msra.mxu0 %v206_v3 }
  0x97   :  { %v117_v21 = vsel %vm94_vm0, %v113_v20, 0.0 }
  0x98   :  { %118 = vadd.xlane.f32.xlu1 %v117_v21 }
  0x99   :  { %224 = vmatpush.bf16.msra.mxu0 %v205_v6 }
  0x9d   :  { %225 = vmatpush.bf16.msra.mxu0 %v204_v9 }
 0x103   :  { %v116_v22 = vpop.xlane.xlu1 %115 }
 0x104   :  { %v120_v23 = vmul.f32 %v116_v22, %v1550_v11 }
 0x106   :  { %v122_v24 = vadd.f32 1e-05, %v120_v23 }
 0x108   :  { %1310 = vrsqrt.f32 %v122_v24  ;;  %vm130_vm3 = vweird.f32 %v122_v24 }
 0x10b   :  { %v119_v25 = vpop.xlane.xlu1 %118 }
 0x10c   :  { %v121_v26 = vmul.f32 %v119_v25, %v1550_v11 }
 0x10e   :  { %v1311_v27 = vpop.eup %1310  ;;  %v123_v28 = vadd.f32 1e-05, %v121_v26 }
 0x10f   :  { %v125_v29 = vmul.f32 %v1311_v27, %v122_v24  ;;  %vm131_vm2 = vweird.f32 %v1311_v27 }
 0x110   :  { %1312 = vrsqrt.f32 %v123_v28  ;;  %vm132_vm4 = vmor %vm130_vm3, %vm131_vm2  ;;  %vm140_vm6 = vweird.f32 %v123_v28  ;;  %vm452_vm3 = vcmask 64512  }
 0x111   :  { %v126_v30 = vmul.f32 %v1311_v27, %v125_v29  ;;  %1314 = vpow2.f32 %v1230_v8 }
 0x113   :  { %v127_v34 = vmul.f32 0.5, %v126_v30 }
 0x115   :  { %v128_v37 = vsub.f32 1.5, %v127_v34 }
 0x116   :  { %v1313_v39 = vpop.eup %1312 }
 0x117   :  { %v129_v42 = vmul.f32 %v1311_v27, %v128_v37  ;;  %v135_v43 = vmul.f32 %v1313_v39, %v123_v28  ;;  %vm141_vm5 = vweird.f32 %v1313_v39 }
 0x118   :  { %vm142_vm7 = vmor %vm140_vm6, %vm141_vm5 }
 0x119   :  { %v136_v44 = vmul.f32 %v1313_v39, %v135_v43  ;;  %v133_v46 = vsel %vm132_vm4, %v1311_v27, %v129_v42  ;;  %vm548_vm4 = vcmask 1043456  }
 0x11a   :  { %v144_v49 = vmul.f32 %v133_v46, %v110_v14  ;;  %v270_v46 = vld [vmem:[%s2025_s30 + $0x10] sm:$0xff] }
 0x11b   :  { %v137_v47 = vmul.f32 0.5, %v136_v44 }
 0x11c   :  { %v149_v54 = vmul.f32 %v1294_v50, %v144_v49  ;;  %v268_v49 = vld [vmem:[%s2025_s30] sm:$0xff] }
 0x11d   :  { %v138_v48 = vsub.f32 1.5, %v137_v47  ;;  %v271_v47 = vld [vmem:[%s2025_s30 + $0x18] sm:$0xff] }
 0x11e   :  { %v1582_v57 = vadd.f32 %v1295_v55, %v149_v54 }
 0x11f   :  { %v139_v51 = vmul.f32 %v1313_v39, %v138_v48  ;;  %v274_v48 = vpack.c.bf16 %v271_v47, %v270_v46  ;;  %v401_v46 = vld [vmem:[%s1987_s14 + $0x8] sm:$0xff]  ;;  %v424_v47 = vld [vmem:[%s1989_s16] sm:$0xff] }
 0x120   :  { %v165_v61 = vrot.slane %v1582_v57, 1  ;;  %v158_v12 = vrot.slane %v1582_v57, 7 }
 0x121   :  { %v143_v52 = vsel %vm142_vm7, %v1313_v39, %v139_v51  ;;  %v1296_v39 = vld [vmem:[%s2024_s7] ss:$0 sm:$0xff]  ;;  %288 = vmatpush.bf16.msra.mxu2 %v274_v48  ;;  %s2027_s7 = sld [smem:[#allocation16_spill]]  ;;  %v425_v48 = vld [vmem:[%s1989_s16 + $0x8] sm:$0xff] }
 0x122   :  { %v145_v53 = vmul.f32 %v143_v52, %v111_v19  ;;  %v170_v63 = vsel %vm169_vm8, %v165_v61, 0.0  ;;  %v163_v17 = vsel %vm162_vm9, 0.0, %v158_v12  ;;  %v1315_v12 = vpop.eup %1314 }
 0x124   :  { %v150_v56 = vmul.f32 %v1294_v50, %v145_v53  ;;  %v269_v50 = vld [vmem:[%s2025_s30 + $0x8] sm:$0xff] }
 0x125   :  { %v273_v51 = vpack.c.bf16 %v269_v50, %v268_v49  ;;  %v428_v50 = vpack.c.bf16 %v425_v48, %v424_v47 }
 0x126   :  { %v1584_v58 = vadd.f32 %v1295_v55, %v150_v56 }
 0x127   :  { %289 = vmatpush.bf16.msra.mxu2 %v273_v51  ;;  %v305_v61 = vld [vmem:[%s2027_s7 + $0x38] sm:$0xff]  ;;  %v300_v2 = vld [vmem:[%s2027_s7 + $0x10] sm:$0xff]  ;;  %v298_v6 = vld [vmem:[%s2027_s7] sm:$0xff] }
 0x128   :  { %v1268_v59 = vpack.i.bf16 %v1584_v58, %v1582_v57  ;;  %v166_v60 = vrot.slane %v1584_v58, 1  ;;  %v159_v13 = vrot.slane %v1584_v58, 7  ;;  %v301_v3 = vld [vmem:[%s2027_s7 + $0x18] sm:$0xff]  ;;  %v299_v7 = vld [vmem:[%s2027_s7 + $0x8] sm:$0xff]  ;;  %v1299_v51 = vld [vmem:[%s2029_s2] ss:$0 sm:$0xff] }
 0x129   :  { %v308_v4 = vpack.c.bf16 %v301_v3, %v300_v2  ;;  %v307_v9 = vpack.c.bf16 %v299_v7, %v298_v6  ;;  %v1300_v7 = vld [vmem:[%s1988_s15] ss:$0 sm:$0xff]  ;;  %s1391_s15 = smov 120  }
 0x12a   :  { %1269 = vrot.lane.b32.xlu2 %v1268_v59, %s1387_s6  ;;  %v171_v62 = vsel %vm169_vm8, %v166_v60, 0.0  ;;  %v164_v18 = vsel %vm162_vm9, 0.0, %v159_v13  ;;  %s2026_s6 = sld [smem:[#allocation13_spill]]  ;;  %v304_v60 = vld [vmem:[%s2027_s7 + $0x30] sm:$0xff]  ;;  %v340_v13 = vadd.f32 1.0, %v1315_v12 }
 0x12b   :  { %v1273_v0 = vpack.i.bf16 %v171_v62, %v170_v63  ;;  %v310_v62 = vpack.c.bf16 %v305_v61, %v304_v60  ;;  %v302_v63 = vld [vmem:[%s2027_s7 + $0x20] sm:$0xff] }
 0x12c   :  { %1316 = vrcp.f32 %v340_v13  ;;  %vm346_vm12 = vweird.f32 %v340_v13 }
 0x12d   :  { %322 = vmatpush.bf16.msra.mxu3 %v310_v62  ;;  %v1390_v62 = vmov 0.0  }
 0x130   :  { %v1297_v53 = vld [vmem:[%s2026_s6] ss:$0 sm:$0xff] }
 0x132   :  { %1274 = vrot.lane.b32.xlu2 %v1273_v0, %s1388_s11  ;;  %s2023_s11 = sld [smem:[#allocation12_spill]]  ;;  %v303_v0 = vld [vmem:[%s2027_s7 + $0x28] sm:$0xff] }
 0x133   :  { %v309_v1 = vpack.c.bf16 %v303_v0, %v302_v63  ;;  %s2030_s7 = sld [smem:[#allocation7_spill]] }
 0x135   :  { %323 = vmatpush.bf16.msra.mxu3 %v309_v1 }
 0x138   :  { %v240_v26 = vld [vmem:[%s2023_s11 + $0x30] sm:$0xff]  ;;  %v241_v27 = vld [vmem:[%s2023_s11 + $0x38] sm:$0xff]  ;;  %v238_v29 = vld [vmem:[%s2023_s11 + $0x20] sm:$0xff] }
 0x139   :  { %v246_v28 = vpack.c.bf16 %v241_v27, %v240_v26  ;;  %v239_v30 = vld [vmem:[%s2023_s11 + $0x28] sm:$0xff]  ;;  %v236_v32 = vld [vmem:[%s2023_s11 + $0x10] sm:$0xff]  ;;  %v237_v33 = vld [vmem:[%s2023_s11 + $0x18] sm:$0xff]  ;;  %324 = vmatpush.bf16.msra.mxu3 %v308_v4 }
 0x13a   :  { %v245_v31 = vpack.c.bf16 %v239_v30, %v238_v29  ;;  %v244_v34 = vpack.c.bf16 %v237_v33, %v236_v32  ;;  %v234_v35 = vld [vmem:[%s2023_s11] sm:$0xff]  ;;  %v235_v36 = vld [vmem:[%s2023_s11 + $0x8] sm:$0xff]  ;;  %v374_v33 = vld [vmem:[%s1985_s12 + $0x10] sm:$0xff] }
 0x13b   :  { %258 = vmatpush.bf16.msra.mxu1 %v246_v28  ;;  %v243_v37 = vpack.c.bf16 %v235_v36, %v234_v35  ;;  %v402_v35 = vld [vmem:[%s1987_s14 + $0x10] sm:$0xff] }
 0x13d   :  { %325 = vmatpush.bf16.msra.mxu3 %v307_v9 }
 0x13f   :  { %259 = vmatpush.bf16.msra.mxu1 %v245_v31 }
 0x143   :  { %260 = vmatpush.bf16.msra.mxu1 %v244_v34  ;;  %v375_v34 = vld [vmem:[%s1985_s12 + $0x18] sm:$0xff] }
 0x144   :  { %v378_v36 = vpack.c.bf16 %v375_v34, %v374_v33 }
 0x146   :  { %392 = vmatpush.bf16.msrb.mxu2 %v378_v36 }
 0x147   :  { %261 = vmatpush.bf16.msra.mxu1 %v243_v37  ;;  %v403_v37 = vld [vmem:[%s1987_s14 + $0x18] sm:$0xff] }
 0x184   :  { %v1270_v10 = vpop.permute.xlu2 %1269 }
 0x185   :  { %v1272_v14 = vunpack.i.h.bf16 %v1270_v10  ;;  %v1271_v15 = vunpack.i.l.bf16 %v1270_v10  ;;  %v1389_v10 = vmov 0  }
 0x186   :  { %1278 = vset.pattern.permute.xlu0 %v1389_v10 }
 0x187   :  { %v186_v21 = vsel %vm94_vm0, %v163_v17, %v1271_v15  ;;  %v187_v22 = vsel %vm94_vm0, %v164_v18, %v1272_v14  ;;  %v1317_v14 = vpop.eup %1316  ;;  %v350_v18 = vand.u32 2147483647, %v340_v13 }
 0x188   :  { %v342_v15 = vmul.f32 %v1317_v14, %v340_v13  ;;  %vm347_vm13 = vweird.f32 %v1317_v14 }
 0x189   :  { %vm348_vm14 = vmor %vm346_vm12, %vm347_vm13  ;;  %vm351_vm15 = vcmp.eq.f32.partialorder %v350_v18, 8.507059e+37 }
 0x18a   :  { %v343_v17 = vsub.f32 1.0, %v342_v15 }
 0x18c   :  { %v1275_v16 = vpop.permute.xlu2 %1274 }
 0x18d   :  { %v1277_v19 = vunpack.i.h.bf16 %v1275_v16  ;;  %v1276_v20 = vunpack.i.l.bf16 %v1275_v16  ;;  %v352_v16 = vand.u32 2147483648, %v340_v13 }
 0x18f   :  { %v189_v23 = vsel %vm188_vm10, %v186_v21, %v1276_v20  ;;  %v190_v24 = vsel %vm188_vm10, %v187_v22, %v1277_v19  ;;  %v344_v19 = vmul.f32 %v1317_v14, %v343_v17  ;;  %v353_v21 = vor.u32 1.1754944e-38, %v352_v16 }
 0x190   :  { %v203_v25 = vpack.c.bf16 %v190_v24, %v189_v23  ;;  %v1298_v23 = vld [vmem:[%s2028_s8] ss:$0 sm:$0xff] }
 0x191   :  { %v345_v22 = vadd.f32 %v1317_v14, %v344_v19 }
 0x192   :  { %1226 = vmatmul.msk.bf16.vlgmr.msra.gmra.mxu0 %vm214_vm11, %v203_v25 }
 0x193   :  { %v349_v24 = vsel %vm348_vm14, %v1317_v14, %v345_v22 }
 0x194   :  { %v354_v25 = vsel %vm351_vm15, %v353_v21, %v349_v24 }
 0x195   :  { %v357_v26 = vperm.slane %v354_v25, 0 }
 0x197   :  { %359 = vperm.xlu0 %1278, %v357_v26  }
 0x20f   :  { %v227_v38 = vpop.f32.mrf.mxu0 }
 0x210   :  { %v228_v40 = vadd.f32 %v1296_v39, %v227_v38  ;;  %v426_v38 = vld [vmem:[%s1989_s16 + $0x10] sm:$0xff] }
 0x212   :  { %v232_v43 = vmax.f32 %v228_v40, 0.0  ;;  %v405_v40 = vpack.c.bf16 %v403_v37, %v402_v35 }
 0x214   :  { %416 = vmatpush.bf16.msrb.mxu1 %v405_v40 }
 0x217   :  { %v229_v41 = vpop.f32.mrf.mxu0 }
 0x218   :  { %v230_v42 = vadd.f32 %v1296_v39, %v229_v41  ;;  %v427_v39 = vld [vmem:[%s1989_s16 + $0x18] sm:$0xff] }
 0x219   :  { %v429_v41 = vpack.c.bf16 %v427_v39, %v426_v38 }
 0x21a   :  { %v233_v44 = vmax.f32 %v230_v42, 0.0  ;;  %v372_v42 = vld [vmem:[%s1985_s12] sm:$0xff] }
 0x21b   :  { %440 = vmatpush.bf16.msrb.mxu3 %v429_v41 }
 0x21c   :  { %v242_v45 = vpack.c.bf16 %v233_v44, %v232_v43  ;;  %v373_v43 = vld [vmem:[%s1985_s12 + $0x8] sm:$0xff]  ;;  %v400_v44 = vld [vmem:[%s1987_s14] sm:$0xff] }
 0x21d   :  { %v404_v49 = vpack.c.bf16 %v401_v46, %v400_v44 }
 0x21e   :  { %1227 = vmatmul.msk.bf16.vlgmr.msra.gmra.mxu1 %vm188_vm10, %v242_v45  ;;  %v377_v45 = vpack.c.bf16 %v373_v43, %v372_v42 }
 0x21f   :  { %417 = vmatpush.bf16.msrb.mxu1 %v404_v49  ;;  %441 = vmatpush.bf16.msrb.mxu3 %v428_v50 }
 0x220   :  { %393 = vmatpush.bf16.msrb.mxu2 %v377_v45 }
 0x29b   :  { %v263_v52 = vpop.f32.mrf.mxu1 }
 0x29c   :  { %v264_v55 = vadd.f32 %v1297_v53, %v263_v52 }
 0x2a3   :  { %v265_v54 = vpop.f32.mrf.mxu1 }
 0x2a4   :  { %v266_v56 = vadd.f32 %v1297_v53, %v265_v54  ;;  %v334_v54 = vld [vmem:[%s2030_s7] sm:$0xff] }
 0x2a6   :  { %v272_v59 = vpack.c.bf16 %v266_v56, %v264_v55  ;;  %v360_v55 = vpop.permute.xlu0 %359 }
 0x2a7   :  { %vm362_vm1 = vcmp.lt.f32.partialorder %v334_v54, %v360_v55 }
 0x2a8   :  { %1228 = vmatmul.msk.bf16.vlgmr.msra.gmra.mxu2 %vm94_vm0, %v272_v59  ;;  %v335_v59 = vld [vmem:[%s2030_s7 + $0x8] sm:$0xff]  ;;  %v1231_v63 = vsel %vm362_vm1, 1.0, %v1390_v62 }
 0x2a9   :  { %vm363_vm2 = vcmp.lt.f32.partialorder %v335_v59, %v360_v55 }
 0x2aa   :  { %v1232_v0 = vsel %vm363_vm2, 1.0, %v1390_v62 }
 0x32b   :  { %v291_v20 = vpop.f32.mrf.mxu2 }
 0x32c   :  { %v292_v27 = vadd.f32 %v1298_v23, %v291_v20 }
 0x32e   :  { %v296_v30 = vmax.f32 %v292_v27, 0.0 }
 0x333   :  { %v293_v28 = vpop.f32.mrf.mxu2 }
 0x334   :  { %v294_v29 = vadd.f32 %v1298_v23, %v293_v28 }
 0x336   :  { %v297_v31 = vmax.f32 %v294_v29, 0.0 }
 0x338   :  { %v306_v32 = vpack.c.bf16 %v297_v31, %v296_v30 }
 0x33a   :  { %1229 = vmatmul.msk.bf16.vlgmr.msra.gmra.mxu3 %vm188_vm10, %v306_v32 }
 0x3bd   :  { %v327_v52 = vpop.f32.mrf.mxu3 }
 0x3be   :  { %v328_v53 = vadd.f32 %v1299_v51, %v327_v52 }
 0x3c0   :  { %1318 = vtanh.f32 %v328_v53 }
 0x3c5   :  { %v329_v56 = vpop.f32.mrf.mxu3 }
 0x3c6   :  { %v330_v60 = vadd.f32 %v1299_v51, %v329_v56  ;;  %v1319_v61 = vpop.eup %1318 }
 0x3c7   :  { %v368_v1 = vmul.f32 %v1319_v61, %v1231_v63 }
 0x3c8   :  { %1320 = vtanh.f32 %v330_v60 }
 0x3c9   :  { %v370_v4 = vadd.f32 %v368_v1, %v1582_v57  ;;  %v1301_v57 = vld [vmem:[%s1986_s13] ss:$0 sm:$0xff]  ;;  %s1392_s13 = smov 112  }
 0x3ce   :  { %v1321_v2 = vpop.eup %1320 }
 0x3cf   :  { %v369_v3 = vmul.f32 %v1321_v2, %v1232_v0 }
 0x3d1   :  { %v371_v5 = vadd.f32 %v369_v3, %v1584_v58  ;;  %v1302_v58 = vld [vmem:[%s1990_s17] ss:$0 sm:$0xff]  ;;  %s1393_s17 = smov 104  }
 0x3d3   :  { %v376_v6 = vpack.c.bf16 %v371_v5, %v370_v4 }
 0x3d5   :  { %1233 = vmatmul.msk.bf16.vlgmr.msrb.gmra.mxu2 %vm94_vm0, %v376_v6  ;;  %1234 = vmatmul.msk.bf16.vlgmr.msrb.gmra.mxu1 %vm94_vm0, %v376_v6 }
 0x3d6   :  { %1235 = vmatmul.msk.bf16.vlgmr.msrb.gmra.mxu3 %vm94_vm0, %v376_v6 }
 0x452   :  { %v419_v8 = vpop.f32.mrf.mxu1 }
 0x453   :  { %v420_v9 = vadd.f32 %v1300_v7, %v419_v8 }
 0x455   :  { %v450_v10 = vpack.c.bf16 %v420_v9, %v420_v9 }
 0x457   :  { %v590_v12 = vunpack.c.l.b16 %v450_v10  ;;  %v457_v13 = vsel %vm452_vm3, %v450_v10, 0 }
 0x458   :  { %v395_v14 = vpop.f32.mrf.mxu2  ;;  %466 = vmatpush.bf16.xpose.msrb.mxu0 %v457_v13 }
 0x459   :  { %v591_v15 = vpack.c.b16 %v590_v12, %v590_v12  ;;  %v396_v16 = vadd.f32 %v1301_v57, %v395_v14  ;;  %v443_v17 = vpop.f32.mrf.mxu3 }
 0x45a   :  { %v444_v18 = vadd.f32 %v1302_v58, %v443_v17  ;;  %v421_v19 = vpop.f32.mrf.mxu1 }
 0x45b   :  { %v448_v20 = vpack.c.bf16 %v396_v16, %v396_v16  ;;  %v422_v21 = vadd.f32 %v1300_v7, %v421_v19  ;;  %592 = vrot.lane.b32.xlu2 %v591_v15, %s1391_s15 }
 0x45c   :  { %v1747_v22 = vpack.c.bf16 %v444_v18, %v444_v18 }
 0x45d   :  { %v585_v23 = vunpack.c.l.b16 %v448_v20  ;;  %v451_v24 = vpack.c.bf16 %v422_v21, %v422_v21 }
 0x45e   :  { %v550_v25 = vsel %vm548_vm4, %v1747_v22, 0 }
 0x45f   :  { %v586_v26 = vpack.c.b16 %v585_v23, %v585_v23  ;;  %v476_v27 = vsel %vm452_vm3, %v451_v24, 0  ;;  %v619_v28 = vunpack.c.l.b16 %v451_v24  ;;  %559 = vmatpush.bf16.msra.mxu1 %v550_v25  ;;  %1236 = vmatmul.msk.bf16.vlgmr.msrb.gmra.mxu0 %vm452_vm3, %v448_v20 }
 0x460   :  { %v397_v29 = vpop.f32.mrf.mxu2  ;;  %485 = vmatpush.bf16.xpose.msra.mxu2 %v476_v27 }
 0x461   :  { %v620_v30 = vpack.c.b16 %v619_v28, %v619_v28  ;;  %v398_v31 = vadd.f32 %v1301_v57, %v397_v29  ;;  %v445_v32 = vpop.f32.mrf.mxu3  ;;  %742 = vrot.lane.b32.xlu0 %v586_v26, %s1392_s13 }
 0x462   :  { %v446_v33 = vadd.f32 %v1302_v58, %v445_v32 }
 0x463   :  { %v449_v34 = vpack.c.bf16 %v398_v31, %v398_v31  ;;  %621 = vrot.lane.b32.xlu1 %v620_v30, %s1391_s15 }
 0x464   :  { %v1755_v35 = vpack.c.bf16 %v446_v33, %v446_v33 }
 0x465   :  { %v614_v36 = vunpack.c.l.b16 %v449_v34 }
 0x466   :  { %v569_v37 = vsel %vm548_vm4, %v1755_v35, 0 }
 0x467   :  { %v615_v38 = vpack.c.b16 %v614_v36, %v614_v36  ;;  %578 = vmatpush.bf16.msra.mxu3 %v569_v37  ;;  %1237 = vmatmul.msk.bf16.vlgmr.msra.gmra.mxu2 %vm452_vm3, %v449_v34 }
 0x469   :  { %616 = vrot.lane.b32.xlu2 %v615_v38, %s1391_s15  ;;  %882 = vrot.lane.b32.xlu0 %v586_v26, %s1393_s17 }
 0x46b   :  { %765 = vrot.lane.b32.xlu1 %v615_v38, %s1392_s13 }
 0x471   :  { %767 = vrot.lane.b32.xlu2 %v620_v30, %s1392_s13 }
 0x473   :  { %907 = vrot.lane.b32.xlu1 %v620_v30, %s1393_s17 }
 0x479   :  { %587 = vrot.lane.b32.xlu2 %v586_v26, %s1391_s15 }
 0x47b   :  { %884 = vrot.lane.b32.xlu1 %v591_v15, %s1393_s17 }
 0x481   :  { %744 = vrot.lane.b32.xlu2 %v591_v15, %s1392_s13 }
 0x489   :  { %905 = vrot.lane.b32.xlu2 %v615_v38, %s1393_s17  ;;  %v695_v38 = vunpack.c.l.b16 %v1747_v22 }
 0x4b5   :  { %v593_v39 = vpop.permute.xlu2 %592 }
 0x4b6   :  { %v598_v40 = vsel %vm452_vm3, %v593_v39, 0  ;;  %v1807_v39 = vpack.c.b16 %v695_v38, %v695_v38 }
 0x4b7   :  { %607 = vmatpush.bf16.xpose.msra.mxu0 %v598_v40 }
 0x4c3   :  { %v617_v41 = vpop.permute.xlu2 %616 }
 0x4cb   :  { %v768_v42 = vpop.permute.xlu2 %767 }
 0x4cc   :  { %v773_v46 = vsel %vm452_vm3, %v768_v42, 0 }
 0x4d3   :  { %v588_v43 = vpop.permute.xlu2 %587  ;;  %v743_v53 = vpop.permute.xlu0 %742 }
 0x4d4   :  { %1240 = vmatmul.msk.bf16.vlgmr.msra.gmra.mxu0 %vm452_vm3, %v588_v43 }
 0x4d5   :  { %v622_v44 = vpop.permute.xlu1 %621 }
 0x4d6   :  { %v627_v45 = vsel %vm452_vm3, %v622_v44, 0 }
 0x4d7   :  { %636 = vmatpush.bf16.xpose.msrb.mxu2 %v627_v45 }
 0x4db   :  { %v745_v47 = vpop.permute.xlu2 %744  ;;  %v883_v1 = vpop.permute.xlu0 %882 }
 0x4dc   :  { %v750_v48 = vsel %vm452_vm3, %v745_v47, 0  ;;  %v468_v49 = vpop.f32.mrf.mxu0 }
 0x4dd   :  { %v491_v50 = vmul.f32 0.35355338, %v468_v49  ;;  %v766_v51 = vpop.permute.xlu1 %765  ;;  %759 = vmatpush.bf16.xpose.msrb.mxu0 %v750_v48 }
 0x4de   :  { %1241 = vmatmul.msk.bf16.vlgmr.msrb.gmra.mxu2 %vm452_vm3, %v617_v41 }
 0x4df   :  { %782 = vmatpush.bf16.xpose.msra.mxu2 %v773_v46  ;;  %v493_v52 = vsel %vm452_vm3, %v491_v50, -inf }
 0x4e0   :  { %494 = vmax.xlane.f32.xlu1 %v493_v52 }
 0x4e3   :  { %v906_v2 = vpop.permute.xlu2 %905 }
 0x4e4   :  { %v470_v54 = vpop.f32.mrf.mxu0  ;;  %1244 = vmatmul.msk.bf16.vlgmr.msrb.gmra.mxu0 %vm452_vm3, %v743_v53 }
 0x4e5   :  { %v908_v55 = vpop.permute.xlu1 %907 }
 0x4e6   :  { %v913_v56 = vsel %vm452_vm3, %v908_v55, 0 }
 0x4e7   :  { %922 = vmatpush.bf16.xpose.msrb.mxu2 %v913_v56 }
 0x4ea   :  { %v487_v59 = vpop.f32.mrf.mxu2 }
 0x4eb   :  { %v492_v60 = vmul.f32 0.35355338, %v487_v59 }
 0x4ed   :  { %v885_v61 = vpop.permute.xlu1 %884  ;;  %v496_v62 = vsel %vm452_vm3, %v492_v60, -inf }
 0x4ee   :  { %v890_v63 = vsel %vm452_vm3, %v885_v61, 0  ;;  %1245 = vmatmul.msk.bf16.vlgmr.msra.gmra.mxu2 %vm452_vm3, %v766_v51  ;;  %497 = vmax.xlane.f32.xlu2 %v496_v62 }
 0x4ef   :  { %899 = vmatpush.bf16.xpose.msra.mxu0 %v890_v63 }
 0x4f2   :  { %v489_v0 = vpop.f32.mrf.mxu2 }
 0x4f6   :  { %1248 = vmatmul.msk.bf16.vlgmr.msra.gmra.mxu0 %vm452_vm3, %v883_v1 }
 0x4fe   :  { %1249 = vmatmul.msk.bf16.vlgmr.msrb.gmra.mxu2 %vm452_vm3, %v906_v2 }
 0x551   :  { %v609_v3 = vpop.f32.mrf.mxu0 }
 0x552   :  { %v642_v4 = vmul.f32 0.35355338, %v609_v3 }
 0x553   :  { %v495_v5 = vpop.xlane.xlu1 %494 }
 0x554   :  { %v499_v6 = vsub.f32 %v491_v50, %v495_v5  ;;  %v644_v7 = vsel %vm452_vm3, %v642_v4, -inf }
 0x555   :  { %645 = vmax.xlane.f32.xlu2 %v644_v7 }
 0x556   :  { %v501_v8 = vmul.f32 1.442695, %v499_v6 }
 0x558   :  { %1322 = vpow2.f32 %v501_v8 }
 0x559   :  { %v611_v9 = vpop.f32.mrf.mxu0 }
 0x55e   :  { %v1784_v10 = vpop.eup %1322 }
 0x55f   :  { %v505_v57 = vsel %vm452_vm3, %v1784_v10, 0.0 }
 0x560   :  { %506 = vadd.xlane.f32.xlu0 %v505_v57 }
 0x561   :  { %v638_v58 = vpop.f32.mrf.mxu2  ;;  %v498_v12 = vpop.xlane.xlu2 %497 }
 0x562   :  { %v500_v13 = vsub.f32 %v492_v60, %v498_v12  ;;  %v761_v14 = vpop.f32.mrf.mxu0  ;;  %v643_v15 = vmul.f32 0.35355338, %v638_v58 }
 0x563   :  { %v788_v16 = vmul.f32 0.35355338, %v761_v14 }
 0x564   :  { %v503_v17 = vmul.f32 1.442695, %v500_v13  ;;  %v647_v19 = vsel %vm452_vm3, %v643_v15, -inf }
 0x565   :  { %v790_v18 = vsel %vm452_vm3, %v788_v16, -inf }
 0x566   :  { %1324 = vpow2.f32 %v503_v17  ;;  %791 = vmax.xlane.f32.xlu2 %v790_v18 }
 0x568   :  { %648 = vmax.xlane.f32.xlu0 %v647_v19 }
 0x569   :  { %v640_v20 = vpop.f32.mrf.mxu2 }
 0x56a   :  { %v763_v21 = vpop.f32.mrf.mxu0 }
 0x56c   :  { %v1790_v23 = vpop.eup %1324 }
 0x56d   :  { %v508_v24 = vsel %vm452_vm3, %v1790_v23, 0.0 }
 0x56e   :  { %509 = vadd.xlane.f32.xlu1 %v508_v24 }
 0x571   :  { %v784_v25 = vpop.f32.mrf.mxu2 }
 0x572   :  { %v1794_v26 = vmul.f32 0.35355338, %v784_v25 }
 0x573   :  { %v901_v27 = vpop.f32.mrf.mxu0 }
 0x574   :  { %v1796_v28 = vmul.f32 0.35355338, %v901_v27  ;;  %v793_v29 = vsel %vm452_vm3, %v1794_v26, -inf }
 0x576   :  { %794 = vmax.xlane.f32.xlu1 %v793_v29  ;;  %v930_v30 = vsel %vm452_vm3, %v1796_v28, -inf }
 0x577   :  { %931 = vmax.xlane.f32.xlu2 %v930_v30 }
 0x579   :  { %v786_v31 = vpop.f32.mrf.mxu2 }
 0x57b   :  { %v903_v32 = vpop.f32.mrf.mxu0 }
 0x581   :  { %v924_v33 = vpop.f32.mrf.mxu2 }
 0x582   :  { %v1802_v34 = vmul.f32 0.35355338, %v924_v33 }
 0x584   :  { %v933_v36 = vsel %vm452_vm3, %v1802_v34, -inf }
 0x585   :  { %934 = vmax.xlane.f32.xlu0 %v933_v36 }
 0x589   :  { %v926_v37 = vpop.f32.mrf.mxu2 }
 0x599   :  { %697 = vrot.lane.b32.xlu0 %v1807_v39, %s1391_s15 }
 0x5c8   :  { %v646_v40 = vpop.xlane.xlu2 %645 }
 0x5c9   :  { %v650_v41 = vsub.f32 %v642_v4, %v646_v40 }
 0x5cb   :  { %v652_v42 = vmul.f32 1.442695, %v650_v41 }
 0x5cd   :  { %1326 = vpow2.f32 %v652_v42 }
 0x5d3   :  { %v1811_v43 = vpop.eup %1326  ;;  %v507_v44 = vpop.xlane.xlu0 %506 }
 0x5d4   :  { %1328 = vrcp.f32 %v507_v44  ;;  %v656_v45 = vsel %vm452_vm3, %v1811_v43, 0.0  ;;  %v522_v53 = vand.u32 2147483648, %v507_v44  ;;  %v520_v56 = vand.u32 2147483647, %v507_v44 }
 0x5d5   :  { %657 = vadd.xlane.f32.xlu2 %v656_v45  ;;  %vm516_vm6 = vweird.f32 %v507_v44 }
 0x5d6   :  { %v523_v61 = vor.u32 1.1754944e-38, %v522_v53  ;;  %vm521_vm8 = vcmp.eq.f32.partialorder %v520_v56, 8.507059e+37 }
 0x5d9   :  { %v792_v46 = vpop.xlane.xlu2 %791 }
 0x5da   :  { %v1329_v47 = vpop.eup %1328  ;;  %v796_v22 = vsub.f32 %v788_v16, %v792_v46 }
 0x5db   :  { %v512_v48 = vmul.f32 %v1329_v47, %v507_v44  ;;  %v649_v49 = vpop.xlane.xlu0 %648  ;;  %vm517_vm5 = vweird.f32 %v1329_v47 }
 0x5dc   :  { %v798_v50 = vmul.f32 1.442695, %v796_v22  ;;  %v651_v51 = vsub.f32 %v643_v15, %v649_v49  ;;  %vm518_vm7 = vmor %vm516_vm6, %vm517_vm5 }
 0x5dd   :  { %v513_v52 = vsub.f32 1.0, %v512_v48 }
 0x5de   :  { %1330 = vpow2.f32 %v798_v50  ;;  %v654_v54 = vmul.f32 1.442695, %v651_v51 }
 0x5df   :  { %v514_v55 = vmul.f32 %v1329_v47, %v513_v52 }
 0x5e0   :  { %1332 = vpow2.f32 %v654_v54 }
 0x5e1   :  { %v515_v59 = vadd.f32 %v1329_v47, %v514_v55  ;;  %v510_v60 = vpop.xlane.xlu1 %509 }
 0x5e2   :  { %1334 = vrcp.f32 %v510_v60  ;;  %v535_v13 = vand.u32 2147483647, %v510_v60  ;;  %vm531_vm11 = vweird.f32 %v510_v60 }
 0x5e3   :  { %v519_v62 = vsel %vm518_vm7, %v1329_v47, %v515_v59 }
 0x5e4   :  { %v1815_v63 = vpop.eup %1330  ;;  %v524_v0 = vsel %vm521_vm8, %v523_v61, %v519_v62  ;;  %vm536_vm13 = vcmp.eq.f32.partialorder %v535_v13, 8.507059e+37 }
 0x5e5   :  { %v525_v1 = vmul.f32 %v1784_v10, %v524_v0  ;;  %v802_v2 = vsel %vm452_vm3, %v1815_v63, 0.0  ;;  %v537_v10 = vand.u32 2147483648, %v510_v60 }
 0x5e6   :  { %v1820_v3 = vpop.eup %1332  ;;  %803 = vadd.xlane.f32.xlu2 %v802_v2 }
 0x5e7   :  { %v659_v4 = vsel %vm452_vm3, %v1820_v3, 0.0  ;;  %v541_v5 = vpack.c.bf16 %v525_v1, %v525_v1  ;;  %v538_v15 = vor.u32 1.1754944e-38, %v537_v10 }
 0x5e8   :  { %v1335_v6 = vpop.eup %1334  ;;  %660 = vadd.xlane.f32.xlu1 %v659_v4 }
 0x5e9   :  { %v527_v7 = vmul.f32 %v1335_v6, %v510_v60  ;;  %1238 = vmatmul.msk.bf16.vlgmr.msra.gmra.mxu1 %vm452_vm3, %v541_v5  ;;  %v795_v8 = vpop.xlane.xlu1 %794  ;;  %vm532_vm9 = vweird.f32 %v1335_v6 }
 0x5ea   :  { %v797_v9 = vsub.f32 %v1794_v26, %v795_v8  ;;  %vm533_vm12 = vmor %vm531_vm11, %vm532_vm9  ;;  %v719_v26 = vunpack.c.l.b16 %v1755_v35  ;;  %v932_v35 = vpop.xlane.xlu2 %931 }
 0x5eb   :  { %v528_v57 = vsub.f32 1.0, %v527_v7  ;;  %v936_v33 = vsub.f32 %v1796_v28, %v932_v35 }
 0x5ec   :  { %v800_v58 = vmul.f32 1.442695, %v797_v9  ;;  %v720_v29 = vpack.c.b16 %v719_v26, %v719_v26 }
 0x5ed   :  { %v529_v12 = vmul.f32 %v1335_v6, %v528_v57 }
 0x5ee   :  { %1336 = vpow2.f32 %v800_v58 }
 0x5ef   :  { %v530_v14 = vadd.f32 %v1335_v6, %v529_v12 }
 0x5f1   :  { %v534_v16 = vsel %vm533_vm12, %v1335_v6, %v530_v14 }
 0x5f2   :  { %v539_v17 = vsel %vm536_vm13, %v538_v15, %v534_v16 }
 0x5f3   :  { %v540_v18 = vmul.f32 %v1790_v23, %v539_v17 }
 0x5f4   :  { %v1827_v19 = vpop.eup %1336 }
 0x5f5   :  { %v805_v20 = vsel %vm452_vm3, %v1827_v19, 0.0  ;;  %v542_v21 = vpack.c.bf16 %v540_v18, %v540_v18 }
 0x5f6   :  { %806 = vadd.xlane.f32.xlu0 %v805_v20 }
 0x5f7   :  { %1239 = vmatmul.msk.bf16.vlgmr.msra.gmra.mxu3 %vm452_vm3, %v542_v21 }
 0x5f8   :  { %v935_v24 = vpop.xlane.xlu0 %934 }
 0x5f9   :  { %v937_v25 = vsub.f32 %v1802_v34, %v935_v24  ;;  %v938_v34 = vmul.f32 1.442695, %v936_v33 }
 0x5fb   :  { %v940_v27 = vmul.f32 1.442695, %v937_v25 }
 0x5fd   :  { %1338 = vpow2.f32 %v940_v27 }
 0x5fe   :  { %1340 = vpow2.f32 %v938_v34 }
 0x601   :  { %721 = vrot.lane.b32.xlu1 %v720_v29, %s1391_s15 }
 0x603   :  { %v1835_v23 = vpop.eup %1338 }
 0x604   :  { %v945_v30 = vsel %vm452_vm3, %v1835_v23, 0.0  ;;  %v1847_v36 = vpop.eup %1340 }
 0x605   :  { %946 = vadd.xlane.f32.xlu2 %v945_v30  ;;  %v942_v37 = vsel %vm452_vm3, %v1847_v36, 0.0 }
 0x60a   :  { %840 = vrot.lane.b32.xlu0 %v1807_v39, %s1392_s13 }
 0x60b   :  { %v698_v31 = vpop.permute.xlu0 %697 }
 0x60c   :  { %v703_v32 = vsel %vm548_vm4, %v698_v31, 0 }
 0x60d   :  { %712 = vmatpush.bf16.msrb.mxu1 %v703_v32 }
 0x612   :  { %1001 = vrot.lane.b32.xlu0 %v720_v29, %s1393_s17 }
 0x61a   :  { %980 = vrot.lane.b32.xlu0 %v1807_v39, %s1393_s17  ;;  %s1214_s17 = sshll.u32 %s2000_s27, 4  ;;  %s1215_s17 = int_to_ptr.hbm [resolvable:$true] %s1214_s17 }
 0x61d   :  { %861 = vrot.lane.b32.xlu2 %v720_v29, %s1392_s13 }
 0x62b   :  { %943 = vadd.xlane.f32.xlu1 %v942_v37 }
 0x648   :  { %v658_v38 = vpop.xlane.xlu2 %657 }
 0x649   :  { %1342 = vrcp.f32 %v658_v38  ;;  %v673_v44 = vand.u32 2147483648, %v658_v38  ;;  %v671_v45 = vand.u32 2147483647, %v658_v38  ;;  %vm667_vm15 = vweird.f32 %v658_v38 }
 0x64b   :  { %v674_v46 = vor.u32 1.1754944e-38, %v673_v44  ;;  %vm672_vm2 = vcmp.eq.f32.partialorder %v671_v45, 8.507059e+37 }
 0x64f   :  { %v1343_v40 = vpop.eup %1342 }
 0x650   :  { %v663_v41 = vmul.f32 %v1343_v40, %v658_v38  ;;  %vm668_vm14 = vweird.f32 %v1343_v40 }
 0x651   :  { %vm669_vm1 = vmor %vm667_vm15, %vm668_vm14 }
 0x652   :  { %v664_v42 = vsub.f32 1.0, %v663_v41 }
 0x654   :  { %v665_v28 = vmul.f32 %v1343_v40, %v664_v42 }
 0x656   :  { %v666_v39 = vadd.f32 %v1343_v40, %v665_v28 }
 0x658   :  { %v670_v47 = vsel %vm669_vm1, %v1343_v40, %v666_v39 }
 0x659   :  { %v804_v22 = vpop.xlane.xlu2 %803  ;;  %v675_v48 = vsel %vm672_vm2, %v674_v46, %v670_v47 }
 0x65a   :  { %v676_v49 = vmul.f32 %v1811_v43, %v675_v48  ;;  %1344 = vrcp.f32 %v804_v22  ;;  %v819_v10 = vand.u32 2147483648, %v804_v22  ;;  %vm813_vm11 = vweird.f32 %v804_v22 }
 0x65b   :  { %v661_v50 = vpop.xlane.xlu1 %660  ;;  %v817_v12 = vand.u32 2147483647, %v804_v22 }
 0x65c   :  { %1346 = vrcp.f32 %v661_v50  ;;  %v692_v51 = vpack.c.bf16 %v676_v49, %v676_v49  ;;  %v688_v0 = vand.u32 2147483648, %v661_v50  ;;  %vm682_vm6 = vweird.f32 %v661_v50 }
 0x65d   :  { %v686_v43 = vand.u32 2147483647, %v661_v50  ;;  %v820_v18 = vor.u32 1.1754944e-38, %v819_v10  ;;  %vm818_vm13 = vcmp.eq.f32.partialorder %v817_v12, 8.507059e+37 }
 0x65e   :  { %1242 = vmatmul.msk.bf16.vlgmr.msrb.gmra.mxu1 %vm452_vm3, %v692_v51  ;;  %v689_v5 = vor.u32 1.1754944e-38, %v688_v0 }
 0x65f   :  { %vm687_vm8 = vcmp.eq.f32.partialorder %v686_v43, 8.507059e+37 }
 0x660   :  { %v1345_v52 = vpop.eup %1344 }
 0x661   :  { %v809_v55 = vmul.f32 %v1345_v52, %v804_v22  ;;  %vm814_vm9 = vweird.f32 %v1345_v52 }
 0x662   :  { %v1347_v53 = vpop.eup %1346  ;;  %vm815_vm12 = vmor %vm813_vm11, %vm814_vm9 }
 0x663   :  { %v678_v54 = vmul.f32 %v1347_v53, %v661_v50  ;;  %vm683_vm5 = vweird.f32 %v1347_v53  ;;  %v810_v61 = vsub.f32 1.0, %v809_v55 }
 0x664   :  { %vm684_vm7 = vmor %vm682_vm6, %vm683_vm5 }
 0x665   :  { %v679_v56 = vsub.f32 1.0, %v678_v54  ;;  %v811_v4 = vmul.f32 %v1345_v52, %v810_v61 }
 0x666   :  { %v1853_v59 = vpop.f32.mrf.mxu1 }
 0x667   :  { %v680_v60 = vmul.f32 %v1347_v53, %v679_v56  ;;  %v812_v9 = vadd.f32 %v1345_v52, %v811_v4 }
 0x669   :  { %v681_v62 = vadd.f32 %v1347_v53, %v680_v60  ;;  %v807_v1 = vpop.xlane.xlu0 %806  ;;  %v816_v16 = vsel %vm815_vm12, %v1345_v52, %v812_v9 }
 0x66a   :  { %1348 = vrcp.f32 %v807_v1  ;;  %v821_v21 = vsel %vm818_vm13, %v820_v18, %v816_v16  ;;  %vm828_vm15 = vweird.f32 %v807_v1  ;;  %v832_v26 = vand.u32 2147483647, %v807_v1 }
 0x66b   :  { %v685_v2 = vsel %vm684_vm7, %v1347_v53, %v681_v62  ;;  %v822_v29 = vmul.f32 %v1815_v63, %v821_v21  ;;  %v1056_v21 = vld [vmem:[%s1991_s18 + $0x10] sm:$0xff]  ;;  %vm1048_vm13 = vcmask 130048  }
 0x66c   :  { %v690_v7 = vsel %vm687_vm8, %v689_v5, %v685_v2  ;;  %vm833_vm2 = vcmp.eq.f32.partialorder %v832_v26, 8.507059e+37  ;;  %v1055_v26 = vld [vmem:[%s1991_s18 + $0x8] sm:$0xff] }
 0x66d   :  { %v691_v58 = vmul.f32 %v1820_v3, %v690_v7  ;;  %v834_v3 = vand.u32 2147483648, %v807_v1  ;;  %v838_v37 = vpack.c.bf16 %v822_v29, %v822_v29 }
 0x66e   :  { %v563_v6 = vpop.f32.mrf.mxu1 }
 0x66f   :  { %v693_v20 = vpack.c.bf16 %v691_v58, %v691_v58  ;;  %v835_v32 = vor.u32 1.1754944e-38, %v834_v3  ;;  %v1054_v3 = vld [vmem:[%s1991_s18] sm:$0xff] }
 0x670   :  { %v1349_v8 = vpop.eup %1348  ;;  %v1059_v29 = vpack.c.bf16 %v1055_v26, %v1054_v3 }
 0x671   :  { %v824_v57 = vmul.f32 %v1349_v8, %v807_v1  ;;  %vm829_vm14 = vweird.f32 %v1349_v8 }
 0x672   :  { %vm830_vm1 = vmor %vm828_vm15, %vm829_vm14  ;;  %vm1051_vm14 = vcmask 195584  }
 0x673   :  { %v825_v13 = vsub.f32 1.0, %v824_v57  ;;  %v722_v14 = vpop.permute.xlu1 %721 }
 0x674   :  { %v727_v15 = vsel %vm548_vm4, %v722_v14, 0 }
 0x675   :  { %v826_v17 = vmul.f32 %v1349_v8, %v825_v13  ;;  %736 = vmatpush.bf16.msrb.mxu3 %v727_v15 }
 0x677   :  { %v827_v24 = vadd.f32 %v1349_v8, %v826_v17 }
 0x678   :  { %1243 = vmatmul.msk.bf16.vlgmr.msrb.gmra.mxu3 %vm452_vm3, %v693_v20  ;;  %v947_v25 = vpop.xlane.xlu2 %946 }
 0x679   :  { %1350 = vrcp.f32 %v947_v25  ;;  %v831_v30 = vsel %vm830_vm1, %v1349_v8, %v827_v24  ;;  %v974_v22 = vand.u32 2147483648, %v947_v25  ;;  %vm968_vm6 = vweird.f32 %v947_v25  ;;  %v1057_v24 = vld [vmem:[%s1991_s18 + $0x18] sm:$0xff] }
 0x67a   :  { %v1858_v27 = vpop.f32.mrf.mxu3  ;;  %v836_v34 = vsel %vm833_vm2, %v835_v32, %v831_v30  ;;  %v972_v48 = vand.u32 2147483647, %v947_v25 }
 0x67b   :  { %v837_v42 = vmul.f32 %v1827_v19, %v836_v34  ;;  %v975_v19 = vor.u32 1.1754944e-38, %v974_v22 }
 0x67c   :  { %v841_v31 = vpop.permute.xlu0 %840  ;;  %vm973_vm8 = vcmp.eq.f32.partialorder %v972_v48, 8.507059e+37 }
 0x67d   :  { %v846_v35 = vsel %vm548_vm4, %v841_v31, 0  ;;  %v839_v46 = vpack.c.bf16 %v837_v42, %v837_v42 }
 0x67e   :  { %855 = vmatpush.bf16.msra.mxu1 %v846_v35 }
 0x67f   :  { %v1351_v33 = vpop.eup %1350 }
 0x680   :  { %v964_v38 = vmul.f32 %v1351_v33, %v947_v25  ;;  %v862_v40 = vpop.permute.xlu2 %861  ;;  %vm969_vm5 = vweird.f32 %v1351_v33  ;;  %v1060_v25 = vpack.c.bf16 %v1057_v24, %v1056_v21 }
 0x681   :  { %v867_v41 = vsel %vm548_vm4, %v862_v40, 0  ;;  %1246 = vmatmul.msk.bf16.vlgmr.msra.gmra.mxu1 %vm452_vm3, %v838_v37  ;;  %vm970_vm7 = vmor %vm968_vm6, %vm969_vm5 }
 0x682   :  { %v965_v63 = vsub.f32 1.0, %v964_v38  ;;  %v582_v44 = vpop.f32.mrf.mxu3  ;;  %876 = vmatpush.bf16.msra.mxu3 %v867_v41  ;;  %1074 = vmatpush.bf16.msrb.mxu0 %v1060_v25 }
 0x684   :  { %v966_v28 = vmul.f32 %v1351_v33, %v965_v63  ;;  %v1002_v45 = vpop.permute.xlu0 %1001 }
 0x685   :  { %v1007_v39 = vsel %vm548_vm4, %v1002_v45, 0 }
 0x686   :  { %1016 = vmatpush.bf16.msrb.mxu3 %v1007_v39  ;;  %v967_v47 = vadd.f32 %v1351_v33, %v966_v28  ;;  %1075 = vmatpush.bf16.msrb.mxu0 %v1059_v29 }
 0x688   :  { %1247 = vmatmul.msk.bf16.vlgmr.msra.gmra.mxu3 %vm452_vm3, %v839_v46  ;;  %v971_v49 = vsel %vm970_vm7, %v1351_v33, %v967_v47  ;;  %v1303_v46 = vld [vmem:[%s1992_s19] ss:$0 sm:$0xff] }
 0x689   :  { %v976_v52 = vsel %vm973_vm8, %v975_v19, %v971_v49  ;;  %v1359_v19 = vld [vmem:[%s2019_s9 + $0x8] sm:$0xff] }
 0x68a   :  { %v977_v53 = vmul.f32 %v1835_v23, %v976_v52 }
 0x68c   :  { %v981_v50 = vpop.permute.xlu0 %980  ;;  %v979_v54 = vpack.c.bf16 %v977_v53, %v977_v53 }
 0x68d   :  { %v986_v51 = vsel %vm548_vm4, %v981_v50, 0 }
 0x68e   :  { %995 = vmatpush.bf16.msrb.mxu1 %v986_v51 }
 0x698   :  { %1251 = vmatmul.msk.bf16.vlgmr.msrb.gmra.mxu3 %vm452_vm3, %v979_v54 }
 0x69e   :  { %v944_v55 = vpop.xlane.xlu1 %943 }
 0x69f   :  { %1352 = vrcp.f32 %v944_v55  ;;  %v959_v62 = vand.u32 2147483648, %v944_v55  ;;  %v957_v1 = vand.u32 2147483647, %v944_v55  ;;  %vm953_vm11 = vweird.f32 %v944_v55 }
 0x6a1   :  { %v960_v2 = vor.u32 1.1754944e-38, %v959_v62  ;;  %vm958_vm12 = vcmp.eq.f32.partialorder %v957_v1, 8.507059e+37 }
 0x6a5   :  { %v1353_v56 = vpop.eup %1352 }
 0x6a6   :  { %v949_v60 = vmul.f32 %v1353_v56, %v944_v55  ;;  %vm954_vm9 = vweird.f32 %v1353_v56 }
 0x6a7   :  { %vm955_vm4 = vmor %vm953_vm11, %vm954_vm9 }
 0x6a8   :  { %v950_v61 = vsub.f32 1.0, %v949_v60 }
 0x6aa   :  { %v951_v0 = vmul.f32 %v1353_v56, %v950_v61 }
 0x6ac   :  { %v952_v43 = vadd.f32 %v1353_v56, %v951_v0 }
 0x6ae   :  { %v956_v4 = vsel %vm955_vm4, %v1353_v56, %v952_v43 }
 0x6af   :  { %v961_v5 = vsel %vm958_vm12, %v960_v2, %v956_v4  ;;  %v1142_v2 = vld [vmem:[%s1995_s22 + $0x10] sm:$0xff]  ;;  %v1143_v4 = vld [vmem:[%s1995_s22 + $0x18] sm:$0xff] }
 0x6b0   :  { %v962_v23 = vmul.f32 %v1847_v36, %v961_v5 }
 0x6b2   :  { %v978_v6 = vpack.c.bf16 %v962_v23, %v962_v23  ;;  %v1146_v23 = vpack.c.bf16 %v1143_v4, %v1142_v2 }
 0x6b4   :  { %1250 = vmatmul.msk.bf16.vlgmr.msrb.gmra.mxu1 %vm452_vm3, %v978_v6  ;;  %1160 = vmatpush.bf16.msra.mxu2 %v1146_v23 }
 0x6db   :  { %v714_v7 = vpop.f32.mrf.mxu1 }
 0x6e3   :  { %v716_v8 = vpop.f32.mrf.mxu1 }
 0x6e4   :  { %v1140_v8 = vld [vmem:[%s1995_s22] sm:$0xff] }
 0x6fb   :  { %v738_v9 = vpop.f32.mrf.mxu3 }
 0x6fc   :  { %v1279_v57 = vpack.i.bf16 %v738_v9, %v714_v7  ;;  %v1141_v9 = vld [vmem:[%s1995_s22 + $0x8] sm:$0xff] }
 0x6fe   :  { %1280 = vrot.lane.b32.xlu2 %v1279_v57, %s1394_s0  ;;  %v857_v10 = vpop.f32.mrf.mxu1  ;;  %v1145_v57 = vpack.c.bf16 %v1141_v9, %v1140_v8 }
 0x700   :  { %1161 = vmatpush.bf16.msra.mxu2 %v1145_v57 }
 0x703   :  { %v740_v58 = vpop.f32.mrf.mxu3 }
 0x706   :  { %v859_v12 = vpop.f32.mrf.mxu1 }
 0x70b   :  { %v878_v13 = vpop.f32.mrf.mxu3 }
 0x70c   :  { %v1284_v14 = vpack.i.bf16 %v878_v13, %v857_v10 }
 0x70e   :  { %1285 = vrot.lane.b32.xlu0 %v1284_v14, %s1395_s29  ;;  %s1397_s29 = smov [#allocation3]  }
 0x70f   :  { %s1212_s22 = sshll.u32 %s1397_s29, 4  ;;  %s1213_s22 = int_to_ptr.vmem [resolvable:$true] %s1212_s22 }
 0x713   :  { %v880_v15 = vpop.f32.mrf.mxu3 }
 0x71b   :  { %v1018_v16 = vpop.f32.mrf.mxu3 }
 0x723   :  { %v1020_v36 = vpop.f32.mrf.mxu3 }
 0x731   :  { %v997_v17 = vpop.f32.mrf.mxu1 }
 0x732   :  { %v1289_v18 = vpack.i.bf16 %v1018_v16, %v997_v17 }
 0x734   :  { %1290 = vrot.lane.b32.xlu2 %v1289_v18, %s1396_s1 }
 0x739   :  { %v999_v20 = vpop.f32.mrf.mxu1 }
 0x758   :  { %v1281_v30 = vpop.permute.xlu2 %1280 }
 0x759   :  { %v1283_v32 = vunpack.i.h.bf16 %v1281_v30  ;;  %v1282_v35 = vunpack.i.l.bf16 %v1281_v30 }
 0x75b   :  { %v1047_v38 = vsel %vm452_vm3, %v1858_v27, %v1283_v32  ;;  %v1046_v40 = vsel %vm452_vm3, %v1853_v59, %v1282_v35  ;;  %v1358_v27 = vld [vmem:[%s2019_s9] sm:$0xff] }
 0x780   :  { %v1286_v31 = vpop.permute.xlu0 %1285 }
 0x781   :  { %v1288_v33 = vunpack.i.h.bf16 %v1286_v31  ;;  %v1287_v34 = vunpack.i.l.bf16 %v1286_v31  ;;  %v1305_v31 = vld [vmem:[%s1994_s21] ss:$0 sm:$0xff] }
 0x783   :  { %v1049_v63 = vsel %vm1048_vm13, %v1046_v40, %v1287_v34  ;;  %v1050_v44 = vsel %vm1048_vm13, %v1047_v38, %v1288_v33  ;;  %v1176_v40 = vld [vmem:[%s1997_s24 + $0x30] sm:$0xff] }
 0x78e   :  { %v1291_v37 = vpop.permute.xlu2 %1290 }
 0x78f   :  { %v1293_v41 = vunpack.i.h.bf16 %v1291_v37  ;;  %v1292_v42 = vunpack.i.l.bf16 %v1291_v37 }
 0x791   :  { %v1052_v28 = vsel %vm1051_vm14, %v1049_v63, %v1292_v42  ;;  %v1053_v45 = vsel %vm1051_vm14, %v1050_v44, %v1293_v41  ;;  %v1177_v41 = vld [vmem:[%s1997_s24 + $0x38] sm:$0xff]  ;;  %v1174_v63 = vld [vmem:[%s1997_s24 + $0x20] sm:$0xff]  ;;  %v1175_v44 = vld [vmem:[%s1997_s24 + $0x28] sm:$0xff] }
 0x792   :  { %v1058_v39 = vpack.c.bf16 %v1053_v45, %v1052_v28  ;;  %v1182_v42 = vpack.c.bf16 %v1177_v41, %v1176_v40  ;;  %v1181_v28 = vpack.c.bf16 %v1175_v44, %v1174_v63  ;;  %v1172_v45 = vld [vmem:[%s1997_s24 + $0x10] sm:$0xff] }
 0x794   :  { %1252 = vmatmul.msk.bf16.vlgmr.msrb.gmra.mxu0 %vm94_vm0, %v1058_v39  ;;  %1194 = vmatpush.bf16.msra.mxu1 %v1182_v42  ;;  %v1173_v39 = vld [vmem:[%s1997_s24 + $0x18] sm:$0xff] }
 0x798   :  { %1195 = vmatpush.bf16.msra.mxu1 %v1181_v28 }
 0x811   :  { %v1077_v47 = vpop.f32.mrf.mxu0 }
 0x812   :  { %v1078_v22 = vadd.f32 %v1303_v46, %v1077_v47  ;;  %v1170_v47 = vld [vmem:[%s1997_s24] sm:$0xff] }
 0x814   :  { %v1896_v59 = vadd.f32 %v1358_v27, %v1078_v22  ;;  %v1171_v22 = vld [vmem:[%s1997_s24 + $0x8] sm:$0xff] }
 0x815   :  { %v1179_v27 = vpack.c.bf16 %v1171_v22, %v1170_v47 }
 0x816   :  { %v1086_v48 = vsel %vm94_vm0, %v1896_v59, 0.0 }
 0x817   :  { %1087 = vadd.xlane.f32.xlu0 %v1086_v48 }
 0x819   :  { %v1079_v49 = vpop.f32.mrf.mxu0 }
 0x81a   :  { %v1080_v50 = vadd.f32 %v1303_v46, %v1079_v49  ;;  %v1180_v46 = vpack.c.bf16 %v1173_v39, %v1172_v45  ;;  %v1306_v49 = vld [vmem:[%s1996_s23] ss:$0 sm:$0xff] }
 0x81c   :  { %v1903_v51 = vadd.f32 %v1359_v19, %v1080_v50  ;;  %1196 = vmatpush.bf16.msra.mxu1 %v1180_v46 }
 0x81e   :  { %v1089_v52 = vsel %vm94_vm0, %v1903_v51, 0.0 }
 0x81f   :  { %1090 = vadd.xlane.f32.xlu2 %v1089_v52 }
 0x820   :  { %1197 = vmatpush.bf16.msra.mxu1 %v1179_v27 }
 0x88a   :  { %v1088_v53 = vpop.xlane.xlu0 %1087 }
 0x88b   :  { %v1092_v54 = vmul.f32 %v1088_v53, %v1550_v11 }
 0x88d   :  { %v1094_v55 = vsub.f32 %v1896_v59, %v1092_v54 }
 0x88f   :  { %v1096_v56 = vmul.f32 %v1094_v55, %v1094_v55 }
 0x891   :  { %v1098_v60 = vsel %vm94_vm0, %v1096_v56, 0.0  ;;  %v1307_v56 = vld [vmem:[%s1998_s25] ss:$0 sm:$0xff]  ;;  %s1398_s25 = smov 128  }
 0x892   :  { %v1091_v61 = vpop.xlane.xlu2 %1090  ;;  %1099 = vadd.xlane.f32.xlu1 %v1098_v60 }
 0x893   :  { %v1093_v62 = vmul.f32 %v1091_v61, %v1550_v11 }
 0x895   :  { %v1095_v0 = vsub.f32 %v1903_v51, %v1093_v62 }
 0x897   :  { %v1097_v1 = vmul.f32 %v1095_v0, %v1095_v0 }
 0x899   :  { %v1101_v43 = vsel %vm94_vm0, %v1097_v1, 0.0 }
 0x89a   :  { %1102 = vadd.xlane.f32.xlu1 %v1101_v43 }
 0x905   :  { %v1100_v5 = vpop.xlane.xlu1 %1099 }
 0x906   :  { %v1104_v6 = vmul.f32 %v1100_v5, %v1550_v11 }
 0x908   :  { %v1106_v7 = vadd.f32 1e-05, %v1104_v6 }
 0x90a   :  { %1354 = vrsqrt.f32 %v1106_v7  ;;  %vm1114_vm15 = vweird.f32 %v1106_v7 }
 0x90d   :  { %v1103_v10 = vpop.xlane.xlu1 %1102 }
 0x90e   :  { %v1105_v58 = vmul.f32 %v1103_v10, %v1550_v11  ;;  %v1304_v11 = vld [vmem:[%s1993_s20] ss:$0 sm:$0xff] }
 0x910   :  { %v1355_v12 = vpop.eup %1354  ;;  %v1107_v13 = vadd.f32 1e-05, %v1105_v58 }
 0x911   :  { %v1109_v14 = vmul.f32 %v1355_v12, %v1106_v7  ;;  %vm1115_vm3 = vweird.f32 %v1355_v12 }
 0x912   :  { %1356 = vrsqrt.f32 %v1107_v13  ;;  %vm1116_vm1 = vmor %vm1114_vm15, %vm1115_vm3  ;;  %vm1124_vm5 = vweird.f32 %v1107_v13 }
 0x913   :  { %v1110_v15 = vmul.f32 %v1355_v12, %v1109_v14 }
 0x915   :  { %v1111_v16 = vmul.f32 0.5, %v1110_v15 }
 0x917   :  { %v1112_v36 = vsub.f32 1.5, %v1111_v16 }
 0x918   :  { %v1357_v17 = vpop.eup %1356 }
 0x919   :  { %v1113_v18 = vmul.f32 %v1355_v12, %v1112_v36  ;;  %v1119_v20 = vmul.f32 %v1357_v17, %v1107_v13  ;;  %vm1125_vm2 = vweird.f32 %v1357_v17 }
 0x91a   :  { %vm1126_vm6 = vmor %vm1124_vm5, %vm1125_vm2 }
 0x91b   :  { %v1120_v21 = vmul.f32 %v1357_v17, %v1119_v20  ;;  %v1117_v24 = vsel %vm1116_vm1, %v1355_v12, %v1113_v18 }
 0x91c   :  { %v1128_v26 = vmul.f32 %v1117_v24, %v1094_v55 }
 0x91d   :  { %v1121_v25 = vmul.f32 0.5, %v1120_v21 }
 0x91e   :  { %v1133_v32 = vmul.f32 %v1304_v11, %v1128_v26 }
 0x91f   :  { %v1122_v3 = vsub.f32 1.5, %v1121_v25 }
 0x920   :  { %v1138_v34 = vadd.f32 %v1305_v31, %v1133_v32 }
 0x921   :  { %v1123_v29 = vmul.f32 %v1357_v17, %v1122_v3 }
 0x923   :  { %v1127_v30 = vsel %vm1126_vm6, %v1357_v17, %v1123_v29 }
 0x924   :  { %v1129_v35 = vmul.f32 %v1127_v30, %v1095_v0 }
 0x926   :  { %v1134_v33 = vmul.f32 %v1304_v11, %v1129_v35 }
 0x928   :  { %v1139_v37 = vadd.f32 %v1305_v31, %v1134_v33 }
 0x92a   :  { %v1144_v38 = vpack.c.bf16 %v1139_v37, %v1138_v34 }
 0x92c   :  { %1253 = vmatmul.msk.bf16.vlgmr.msra.gmra.mxu2 %vm94_vm0, %v1144_v38 }
 0x9af   :  { %v1163_v48 = vpop.f32.mrf.mxu2 }
 0x9b0   :  { %v1164_v50 = vadd.f32 %v1306_v49, %v1163_v48 }
 0x9b2   :  { %v1168_v53 = vmax.f32 %v1164_v50, 0.0 }
 0x9b7   :  { %v1165_v19 = vpop.f32.mrf.mxu2 }
 0x9b8   :  { %v1166_v52 = vadd.f32 %v1306_v49, %v1165_v19 }
 0x9ba   :  { %v1169_v54 = vmax.f32 %v1166_v52, 0.0 }
 0x9bc   :  { %v1178_v55 = vpack.c.bf16 %v1169_v54, %v1168_v53 }
 0x9be   :  { %1254 = vmatmul.msk.bf16.vlgmr.msra.gmra.mxu1 %vm188_vm10, %v1178_v55 }
 0xa3b   :  { %v1199_v60 = vpop.f32.mrf.mxu1 }
 0xa3c   :  { %v1200_v61 = vadd.f32 %v1307_v56, %v1199_v60 }
 0xa3e   :  { %v1204_v62 = vadd.f32 %v1200_v61, %v1896_v59 }
 0xa40   :  { %1206 = vst.msk [vmem:[#allocation3] sm:$0xff] %vm94_vm0, %v1204_v62 }
 0xa43   :  { %v1201_v0 = vpop.f32.mrf.mxu1 }
 0xa44   :  { %v1202_v1 = vadd.f32 %v1307_v56, %v1201_v0 }
 0xa46   :  { %v1205_v43 = vadd.f32 %v1202_v1, %v1903_v51 }
 0xa48   :  { %1207 = vst.msk [vmem:[#allocation3 + $0x8] sm:$0xff] %vm94_vm0, %v1205_v43 }
 0xa49   :  { %1220 = dma.vmem_to_hbm [thread:$0]  %s1213_s22, 256, %s1215_s17, [#allocation4], %s1398_s25, %s1398_s25, %s1394_s0  }
 0xa4a   :  { %1384 = dma.done.wait [#allocation4], 256  }
 0xa4b   :  { %1385 = vsyncadd [#allocation4], 4294967040 }
 0xa4c   :  { %1225 = vsyncpa [#allocation4], 1 }

</bundles_post_ra>
